<compile_context>
chip_gen: v7x
topology: tpu7x:2x2x1
jax: 0.10.0
libtpu: 0.0.40
codegen_flags: <defaults>
</compile_context>

<pallas_src>
import jax
import jax.numpy as jnp
from jax.experimental import pallas as pl
from jax.experimental.pallas import tpu as pltpu

_H1 = 256
_H2 = 64
_H2_PAD = 128  # second hidden padded to full lane width with zero columns (exact math)


def _round_up(n, m):
    return ((n + m - 1) // m) * m


def _mlp_kernel(x_ref, w1_ref, b1_ref, w2_ref, b2_ref, w3_ref, b3_ref, o_ref):
    """One batch tile of sigmoid(relu(relu(x@W1+b1)@W2+b2)@W3 + b3), output lane-dense."""
    # Stream f32 x and cast on-VPU (hidden under DMA/MXU slack); bf16 MXU, f32 acc.
    x = x_ref[...].astype(jnp.bfloat16)
    h1 = jnp.dot(x, w1_ref[...], preferred_element_type=jnp.float32)
    h1 = jnp.maximum(h1 + b1_ref[...], 0.0).astype(jnp.bfloat16)
    # Layer 2 (hidden padded to 128 lanes): bf16 MXU matmul, f32 accumulation.
    h2 = jnp.dot(h1, w2_ref[...], preferred_element_type=jnp.float32)
    h2 = jnp.maximum(h2 + b2_ref[...], 0.0)
    # Layer 3 has N=1: compute it transposed, (1, H2) x (tile_b, H2)^T -> (1, tile_b),
    # so the stored output row is lane-dense (full-lane vst, no 1/128 masked stores).
    logits = jax.lax.dot_general(
        w3_ref[...], h2,
        dimension_numbers=(((1,), (1,)), ((), ())),
        preferred_element_type=jnp.float32) + b3_ref[0, 0]
    # Sigmoid in f32 (EUP exp); manual form keeps the lowering trivially supported.
    o_ref[...] = 1.0 / (1.0 + jnp.exp(-logits))


def prepare_params(params):
    """One-time device-format prep: bf16 weights, layer-2/3 zero-padded to 128 lanes."""
    w1, b1, w2, b2, w3, b3 = params
    indim = w1.shape[0]
    assert w1.shape == (indim, _H1)
    w1_bf = w1.astype(jnp.bfloat16)
    b1_f32 = b1.astype(jnp.float32).reshape(1, _H1)
    w2_pad = jnp.zeros((_H1, _H2_PAD), jnp.bfloat16).at[:, :_H2].set(
        w2.astype(jnp.bfloat16))
    b2_pad = jnp.zeros((1, _H2_PAD), jnp.float32).at[:, :_H2].set(
        b2.astype(jnp.float32).reshape(1, _H2))
    w3_row = jnp.zeros((1, _H2_PAD), jnp.float32).at[:, :_H2].set(
        w3.reshape(1, _H2).astype(jnp.float32))
    b3_f32 = b3.astype(jnp.float32).reshape(1, 1)
    return (w1_bf, b1_f32, w2_pad, b2_pad, w3_row, b3_f32)


def discriminator_forward(x, prepared_params, tile_b=None):
    """Reproduces Discriminator.forward.

    x: 3D input -> flattened to one example, output shape (1,);
       any other rank -> reshaped to (B, -1), output shape (B, 1).
    prepared_params: output of prepare_params().
    """
    squeeze_batch = False
    if x.ndim == 3:
        x2d = x.reshape(1, -1)
        squeeze_batch = True
    else:
        x2d = x.reshape(x.shape[0], -1)

    w1_bf, b1_f32, w2_pad, b2_pad, w3_row, b3_f32 = prepared_params
    B, indim = x2d.shape
    assert w1_bf.shape == (indim, _H1), f"indim mismatch: {indim} vs {w1_bf.shape}"

    # ---- batch tiling -----------------------------------------------------------
    # ~16 MiB of double-buffered f32 x per tile pair, multiples of 128 (v5e MXU),
    # capped at 2048 rows, and kept to >=2 grid steps for v7x's two TensorCores.
    if tile_b is None:
        tile_b = (16 * 1024 * 1024) // max(8 * indim, 1)
    tile_b = max(128, min(int(tile_b), 2048))
    if B > 128:
        tile_b = min(tile_b, _round_up((B + 1) // 2, 128))
    tile_b = min(tile_b, _round_up(max(B, 1), 128))
    tile_b = _round_up(tile_b, 128)
    b_pad = _round_up(max(B, 1), tile_b)
    num_tiles = b_pad // tile_b

    if b_pad != B:
        x2d = jnp.pad(x2d, ((0, b_pad - B), (0, 0)))  # original dtype, no extra cast

    # ---- VMEM budget: resident weights + double-buffered f32 x tiles + temporaries ----
    xbytes = x2d.dtype.itemsize
    resident = indim * _H1 * 2 + _H1 * _H2_PAD * 2 + (_H1 + 2 * _H2_PAD) * 4
    x_tiles = 2 * tile_b * indim * xbytes
    out_tiles = 2 * tile_b * 4
    temps = tile_b * (_H1 * (4 + 2) + _H2_PAD * 4 + 4)
    vmem_limit = int(min(48 * 2**20,
                         max(32 * 2**20, 2 * (resident + x_tiles + out_tiles + temps))))

    out = pl.pallas_call(
        _mlp_kernel,
        out_shape=jax.ShapeDtypeStruct((1, b_pad), jnp.float32),
        grid_spec=pltpu.PrefetchScalarGridSpec(
            num_scalar_prefetch=0,
            grid=(num_tiles,),
            in_specs=[
                pl.BlockSpec((tile_b, indim), lambda i: (i, 0)),    # x tile (pipelined, f32)
                pl.BlockSpec((indim, _H1), lambda i: (0, 0)),       # W1 (resident, bf16)
                pl.BlockSpec((1, _H1), lambda i: (0, 0)),           # b1
                pl.BlockSpec((_H1, _H2_PAD), lambda i: (0, 0)),     # W2 (padded, resident)
                pl.BlockSpec((1, _H2_PAD), lambda i: (0, 0)),       # b2 (padded)
                pl.BlockSpec((1, _H2_PAD), lambda i: (0, 0)),       # w3 as lane row
                pl.BlockSpec(memory_space=pltpu.MemorySpace.SMEM),  # b3 scalar
            ],
            out_specs=pl.BlockSpec((1, tile_b), lambda i: (0, i)),  # lane-dense rows
        ),
        compiler_params=pltpu.CompilerParams(
            dimension_semantics=("parallel",),
            vmem_limit_bytes=vmem_limit),
    )(x2d, w1_bf, b1_f32, w2_pad, b2_pad, w3_row, b3_f32)

    y = out[0, :B]
    if squeeze_batch:
        return y            # matches torch output shape (1,) for 3D input
    return y.reshape(B, 1)


def init_params(indim, key):
    """Deterministic init matching nn.Linear shapes (stored transposed: (in, out))."""
    ks = jax.random.split(key, 6)

    def linear(kw, kb, fan_in, fan_out):
        bound = 1.0 / jnp.sqrt(fan_in)
        w = jax.random.uniform(kw, (fan_in, fan_out), jnp.float32, -bound, bound)
        b = jax.random.uniform(kb, (1, fan_out), jnp.float32, -bound, bound)
        return w, b

    w1, b1 = linear(ks[0], ks[1], indim, _H1)
    w2, b2 = linear(ks[2], ks[3], _H1, _H2)
    w3, b3 = linear(ks[4], ks[5], _H2, 1)
    return (w1, b1, w2, b2, w3, b3)


def _flatten(x):
    return x.reshape(1, -1) if x.ndim == 3 else x.reshape(x.shape[0], -1)


def _reference_forward_f32(x, params):
    w1, b1, w2, b2, w3, b3 = params
    x2d = _flatten(x)
    h1 = jnp.maximum(x2d @ w1 + b1, 0.0)
    h2 = jnp.maximum(h1 @ w2 + b2, 0.0)
    y = jax.nn.sigmoid(h2 @ w3 + b3)
    return y.reshape(1) if x.ndim == 3 else y


def _reference_forward_bf16(x, params):
    """Emulates the kernel's numerics (bf16 layer-1/2 matmuls, f32 accumulation/final)."""
    w1, b1, w2, b2, w3, b3 = params
    x2d = _flatten(x)
    h1 = jnp.dot(x2d.astype(jnp.bfloat16), w1.astype(jnp.bfloat16),
                 preferred_element_type=jnp.float32) + b1
    h1 = jnp.maximum(h1, 0.0).astype(jnp.bfloat16)
    h2 = jnp.dot(h1, w2.astype(jnp.bfloat16),
                 preferred_element_type=jnp.float32) + b2
    h2 = jnp.maximum(h2, 0.0)
    logits = h2 @ w3 + b3
    y = 1.0 / (1.0 + jnp.exp(-logits))
    return y.reshape(1) if x.ndim == 3 else y


if __name__ == "__main__":
    key = jax.random.PRNGKey(0)
    kx, kp, kx2, kx3 = jax.random.split(key, 4)

    # NCHW batch (2, 4, 16, 16) -> flattened indim = 4*16*16 = 1024
    indim = 4 * 16 * 16
    params = init_params(indim, kp)
    prepped = prepare_params(params)          # one-time device-format weight prep

    fwd = jax.jit(discriminator_forward, static_argnames=("tile_b",))

    x = jax.random.normal(kx, (2, 4, 16, 16), jnp.float32)
    y = jax.block_until_ready(fwd(x, prepped))
    assert y.shape == (2, 1), y.shape
    assert jnp.allclose(y, _reference_forward_bf16(x, params), atol=1e-3, rtol=1e-3)
    assert jnp.allclose(y, _reference_forward_f32(x, params), atol=1e-2, rtol=1e-2)

    # Larger, non-multiple batch exercising the multi-grid-step path (3 tiles of 128)
    # with resident weights and lane-dense output rows.
    xb = jax.random.normal(kx2, (300, indim), jnp.float32)
    yb = jax.block_until_ready(fwd(xb, prepped, tile_b=128))
    assert yb.shape == (300, 1), yb.shape
    assert jnp.allclose(yb, _reference_forward_bf16(xb, params), atol=1e-3, rtol=1e-3)

    # Default (auto) tiling on the same batch: >=2 grid steps for megacore sharding.
    yb2 = jax.block_until_ready(fwd(xb, prepped))
    assert jnp.allclose(yb2, yb, atol=1e-5, rtol=1e-5)

    # 3D input path (torch: x.flatten() -> output shape (1,)).
    x3 = jax.random.normal(kx3, (4, 16, 16), jnp.float32)
    y3 = jax.block_until_ready(fwd(x3, prepped))
    assert y3.shape == (1,), y3.shape
    assert jnp.allclose(y3, _reference_forward_bf16(x3, params), atol=1e-3, rtol=1e-3)

    print("KERNEL_OK")
</pallas_src>

<mosaic_0001>
module attributes {stable_mosaic.version = 11 : i64} {
  func.func @_mlp_kernel(%arg0: i32, %arg1: memref<128x1024xf32, #tpu.memory_space<vmem>>, %arg2: memref<1024x256xbf16, #tpu.memory_space<vmem>>, %arg3: memref<1x256xf32, #tpu.memory_space<vmem>>, %arg4: memref<256x128xbf16, #tpu.memory_space<vmem>>, %arg5: memref<1x128xf32, #tpu.memory_space<vmem>>, %arg6: memref<1x128xf32, #tpu.memory_space<vmem>>, %arg7: memref<1x1xf32, #tpu.memory_space<smem>>, %arg8: memref<1x128xf32, #tpu.memory_space<vmem>>) attributes {dimension_semantics = [#tpu.dimension_semantics<parallel>], iteration_bounds = array<i64: 1>, scalar_prefetch = 0 : i64, scratch_operands = 0 : i64, tpu.core_type = #tpu.core_type<tc>, window_params = [{transform_indices = @transform_0, window_bounds = array<i64: 128, 1024>}, {pipeline_mode = #tpu.pipeline_mode<synchronous>, transform_indices = @transform_1, window_bounds = array<i64: 1024, 256>}, {pipeline_mode = #tpu.pipeline_mode<synchronous>, transform_indices = @transform_2, window_bounds = array<i64: 1, 256>}, {pipeline_mode = #tpu.pipeline_mode<synchronous>, transform_indices = @transform_3, window_bounds = array<i64: 256, 128>}, {pipeline_mode = #tpu.pipeline_mode<synchronous>, transform_indices = @transform_4, window_bounds = array<i64: 1, 128>}, {pipeline_mode = #tpu.pipeline_mode<synchronous>, transform_indices = @transform_5, window_bounds = array<i64: 1, 128>}, {transform_indices = @transform_6, window_bounds = array<i64: 1, 1>}, {transform_indices = @transform_7, window_bounds = array<i64: 1, 128>}]} {
    %c0 = arith.constant 0 : index
    %c0_0 = arith.constant 0 : index
    %0 = vector.load %arg1[%c0, %c0_0] : memref<128x1024xf32, #tpu.memory_space<vmem>>, vector<128x1024xf32>
    %1 = arith.truncf %0 : vector<128x1024xf32> to vector<128x1024xbf16>
    %c0_1 = arith.constant 0 : index
    %c0_2 = arith.constant 0 : index
    %2 = vector.load %arg2[%c0_1, %c0_2] : memref<1024x256xbf16, #tpu.memory_space<vmem>>, vector<1024x256xbf16>
    %cst = arith.constant dense<0.000000e+00> : vector<128x256xf32>
    %3 = tpu.matmul %1, %2, %cst {dimension_numbers = #tpu.dot_dimension_numbers<[1], [0], [0], [1], [0, 0, 1, 1], [], []>} : vector<128x1024xbf16>, vector<1024x256xbf16>, vector<128x256xf32> -> vector<128x256xf32>
    %c0_3 = arith.constant 0 : index
    %c0_4 = arith.constant 0 : index
    %4 = vector.load %arg3[%c0_3, %c0_4] : memref<1x256xf32, #tpu.memory_space<vmem>>, vector<1x256xf32>
    %5 = vector.broadcast %4 : vector<1x256xf32> to vector<128x256xf32>
    %6 = arith.addf %3, %5 : vector<128x256xf32>
    %cst_5 = arith.constant 0.000000e+00 : f32
    %7 = vector.broadcast %cst_5 : f32 to vector<128x256xf32>
    %8 = arith.maximumf %6, %7 : vector<128x256xf32>
    %9 = arith.truncf %8 : vector<128x256xf32> to vector<128x256xbf16>
    %c0_6 = arith.constant 0 : index
    %c0_7 = arith.constant 0 : index
    %10 = vector.load %arg4[%c0_6, %c0_7] : memref<256x128xbf16, #tpu.memory_space<vmem>>, vector<256x128xbf16>
    %cst_8 = arith.constant dense<0.000000e+00> : vector<128x128xf32>
    %11 = tpu.matmul %9, %10, %cst_8 {dimension_numbers = #tpu.dot_dimension_numbers<[1], [0], [0], [1], [0, 0, 1, 1], [], []>} : vector<128x256xbf16>, vector<256x128xbf16>, vector<128x128xf32> -> vector<128x128xf32>
    %c0_9 = arith.constant 0 : index
    %c0_10 = arith.constant 0 : index
    %12 = vector.load %arg5[%c0_9, %c0_10] : memref<1x128xf32, #tpu.memory_space<vmem>>, vector<1x128xf32>
    %13 = vector.broadcast %12 : vector<1x128xf32> to vector<128x128xf32>
    %14 = arith.addf %11, %13 : vector<128x128xf32>
    %cst_11 = arith.constant 0.000000e+00 : f32
    %15 = vector.broadcast %cst_11 : f32 to vector<128x128xf32>
    %16 = arith.maximumf %14, %15 : vector<128x128xf32>
    %c0_12 = arith.constant 0 : index
    %c0_13 = arith.constant 0 : index
    %17 = vector.load %arg6[%c0_12, %c0_13] : memref<1x128xf32, #tpu.memory_space<vmem>>, vector<1x128xf32>
    %cst_14 = arith.constant dense<0.000000e+00> : vector<1x128xf32>
    %18 = tpu.matmul %17, %16, %cst_14 {dimension_numbers = #tpu.dot_dimension_numbers<[1], [1], [0], [0], [0, 0, 1, 0], [], []>} : vector<1x128xf32>, vector<128x128xf32>, vector<1x128xf32> -> vector<1x128xf32>
    %c0_15 = arith.constant 0 : index
    %c0_16 = arith.constant 0 : index
    %19 = memref.load %arg7[%c0_15, %c0_16] : memref<1x1xf32, #tpu.memory_space<smem>>
    %20 = vector.broadcast %19 : f32 to vector<1x128xf32>
    %21 = arith.addf %18, %20 : vector<1x128xf32>
    %cst_17 = arith.constant 0.000000e+00 : f32
    %22 = vector.broadcast %cst_17 : f32 to vector<1x128xf32>
    %23 = arith.subf %22, %21 : vector<1x128xf32>
    %24 = math.exp %23 : vector<1x128xf32>
    %cst_18 = arith.constant 1.000000e+00 : f32
    %25 = vector.broadcast %cst_18 : f32 to vector<1x128xf32>
    %26 = arith.addf %25, %24 : vector<1x128xf32>
    %cst_19 = arith.constant 1.000000e+00 : f32
    %27 = vector.broadcast %cst_19 : f32 to vector<1x128xf32>
    %28 = arith.divf %27, %26 : vector<1x128xf32>
    %c0_20 = arith.constant 0 : index
    %c0_21 = arith.constant 0 : index
    %29 = vector.load %arg8[%c0_20, %c0_21] : memref<1x128xf32, #tpu.memory_space<vmem>>, vector<1x128xf32>
    tpu.vector_store %arg8[%c0_20, %c0_21], %28 {strides = array<i32>} : memref<1x128xf32, #tpu.memory_space<vmem>>, vector<1x128xf32>,
    return
  }
  func.func @transform_0(%arg0: i32) -> (i32, i32) {
    %c0_i32 = arith.constant 0 : i32
    %c0_i32_0 = arith.constant 0 : i32
    return %arg0, %c0_i32 : i32, i32
  }
  func.func @transform_1(%arg0: i32) -> (i32, i32) {
    %c0_i32 = arith.constant 0 : i32
    %c0_i32_0 = arith.constant 0 : i32
    %c0_i32_1 = arith.constant 0 : i32
    return %c0_i32, %c0_i32_0 : i32, i32
  }
  func.func @transform_2(%arg0: i32) -> (i32, i32) {
    %c0_i32 = arith.constant 0 : i32
    %c0_i32_0 = arith.constant 0 : i32
    %c0_i32_1 = arith.constant 0 : i32
    return %c0_i32, %c0_i32_0 : i32, i32
  }
  func.func @transform_3(%arg0: i32) -> (i32, i32) {
    %c0_i32 = arith.constant 0 : i32
    %c0_i32_0 = arith.constant 0 : i32
    %c0_i32_1 = arith.constant 0 : i32
    return %c0_i32, %c0_i32_0 : i32, i32
  }
  func.func @transform_4(%arg0: i32) -> (i32, i32) {
    %c0_i32 = arith.constant 0 : i32
    %c0_i32_0 = arith.constant 0 : i32
    %c0_i32_1 = arith.constant 0 : i32
    return %c0_i32, %c0_i32_0 : i32, i32
  }
  func.func @transform_5(%arg0: i32) -> (i32, i32) {
    %c0_i32 = arith.constant 0 : i32
    %c0_i32_0 = arith.constant 0 : i32
    %c0_i32_1 = arith.constant 0 : i32
    return %c0_i32, %c0_i32_0 : i32, i32
  }
  func.func @transform_6(%arg0: i32) -> (i32, i32) {
    %c0_i32 = arith.constant 0 : i32
    %c0_i32_0 = arith.constant 0 : i32
    %c0_i32_1 = arith.constant 0 : i32
    return %c0_i32, %c0_i32_0 : i32, i32
  }
  func.func @transform_7(%arg0: i32) -> (i32, i32) {
    %c0_i32 = arith.constant 0 : i32
    %c0_i32_0 = arith.constant 0 : i32
    return %c0_i32, %arg0 : i32, i32
  }
}

</mosaic_0001>

<bundles_post_ra>
// kernel: discriminator_forward.1
= control target key start
LH: loop header
LB: loop body
LE: loop exit
PB: predicated region body
PF: predicated region fallthrough
CT: control target
= control target key end

     0   :  { %vm2493_vm0 = vmmov 0   ;;  %s3658_s1 = inlined_call_operand.vmem [shape: bf16[1024,256], index: 1, kind: input, shape index: {}]   ;;  %s3659_s0 = inlined_call_operand.vmem [shape: f32[128,1024], index: 0, kind: input, shape index: {}]   ;;  %s3660_s3 = inlined_call_operand.vmem [shape: bf16[256,128], index: 3, kind: input, shape index: {}]   ;;  %s3661_s2 = inlined_call_operand.vmem [shape: f32[1,256], index: 2, kind: input, shape index: {}]   ;;  %s3662_s4 = inlined_call_operand.vmem [shape: f32[1,128], index: 4, kind: input, shape index: {}]   ;;  %s3663_s5 = inlined_call_operand.vmem [shape: f32[1,128], index: 5, kind: input, shape index: {}]   ;;  %s3664_s6 = inlined_call_operand.<no memory space> [shape: f32[1,1], index: 6, kind: input, shape index: {}]   ;;  %s3665_s7 = inlined_call_operand.vmem [shape: f32[1,128], index: 7, kind: output, shape index: {}]  }
   0x1   :  { %v2280_v0 = vld [vmem:[%s3658_s1 + $0x104] ss:$8 sps:$4 sm:$0xff]   ;;  %v2282_v1 = vld [vmem:[%s3658_s1 + $0x100] ss:$8 sps:$4 sm:$0xff]   ;;  %v2283_v2 = vld [vmem:[%s3658_s1 + $0x114] ss:$8 sps:$4 sm:$0xff]  }
   0x2   :  { %1113 = vmatprep.subr.bf16.mxu0 %v2280_v0  ;;  %v2285_v3 = vld [vmem:[%s3658_s1 + $0x110] ss:$8 sps:$4 sm:$0xff]   ;;  %v2286_v4 = vld [vmem:[%s3658_s1 + $0x124] ss:$8 sps:$4 sm:$0xff]   ;;  %v2288_v5 = vld [vmem:[%s3658_s1 + $0x120] ss:$8 sps:$4 sm:$0xff]  }
   0x3   :  { %1114 = vmatpush1.bf16.msra.mxu0 %v2282_v1  ;;  %v2289_v6 = vld [vmem:[%s3658_s1 + $0x134] ss:$8 sps:$4 sm:$0xff]   ;;  %v2291_v7 = vld [vmem:[%s3658_s1 + $0x130] ss:$8 sps:$4 sm:$0xff]   ;;  %v2292_v8 = vld [vmem:[%s3658_s1 + $0x144] ss:$8 sps:$4 sm:$0xff]  }
   0x4   :  { %1115 = vmatprep.subr.bf16.mxu0 %v2283_v2  ;;  %v2307_v9 = vld [vmem:[%s3658_s1 + $0x4] ss:$8 sps:$4 sm:$0xff]   ;;  %v2309_v10 = vld [vmem:[%s3658_s1] ss:$8 sps:$4 sm:$0xff]   ;;  %v2313_v12 = vld [vmem:[%s3658_s1 + $0x14] ss:$8 sps:$4 sm:$0xff]  }
   0x5   :  { %v2294_v11 = vld [vmem:[%s3658_s1 + $0x140] ss:$8 sps:$4 sm:$0xff]   ;;  %1000 = vmatprep.subr.bf16.mxu1 %v2307_v9  ;;  %v2315_v13 = vld [vmem:[%s3658_s1 + $0x10] ss:$8 sps:$4 sm:$0xff]   ;;  %v2295_v14 = vld [vmem:[%s3658_s1 + $0x154] ss:$8 sps:$4 sm:$0xff]  }
   0x6   :  { %1001 = vmatpush1.bf16.msra.mxu1 %v2309_v10  ;;  %v2297_v15 = vld [vmem:[%s3658_s1 + $0x150] ss:$8 sps:$4 sm:$0xff]   ;;  %v2319_v16 = vld [vmem:[%s3658_s1 + $0x24] ss:$8 sps:$4 sm:$0xff]   ;;  %v2321_v18 = vld [vmem:[%s3658_s1 + $0x20] ss:$8 sps:$4 sm:$0xff]  }
   0x7   :  { %1116 = vmatpush1.bf16.msra.mxu0 %v2285_v3  ;;  %1002 = vmatprep.subr.bf16.mxu1 %v2313_v12  ;;  %v2298_v17 = vld [vmem:[%s3658_s1 + $0x164] ss:$8 sps:$4 sm:$0xff]   ;;  %v2325_v19 = vld [vmem:[%s3658_s1 + $0x34] ss:$8 sps:$4 sm:$0xff]   ;;  %v2300_v20 = vld [vmem:[%s3658_s1 + $0x160] ss:$8 sps:$4 sm:$0xff]  }
   0x8   :  { %1117 = vmatprep.subr.bf16.mxu0 %v2286_v4  ;;  %v2301_v21 = vld [vmem:[%s3658_s1 + $0x174] ss:$8 sps:$4 sm:$0xff]   ;;  %v2327_v22 = vld [vmem:[%s3658_s1 + $0x30] ss:$8 sps:$4 sm:$0xff]   ;;  %v2331_v23 = vld [vmem:[%s3658_s1 + $0x44] ss:$8 sps:$4 sm:$0xff]  }
   0x9   :  { %v2303_v24 = vld [vmem:[%s3658_s1 + $0x170] ss:$8 sps:$4 sm:$0xff]   ;;  %v2304_v25 = vld [vmem:[%s3658_s1 + $0x184] ss:$8 sps:$4 sm:$0xff]   ;;  %v2333_v26 = vld [vmem:[%s3658_s1 + $0x40] ss:$8 sps:$4 sm:$0xff]  }
   0xa   :  { %1003 = vmatpush1.bf16.msra.mxu1 %v2315_v13  ;;  %v2337_v27 = vld [vmem:[%s3658_s1 + $0x54] ss:$8 sps:$4 sm:$0xff]   ;;  %v2306_v28 = vld [vmem:[%s3658_s1 + $0x180] ss:$8 sps:$4 sm:$0xff]   ;;  %v2339_v30 = vld [vmem:[%s3658_s1 + $0x50] ss:$8 sps:$4 sm:$0xff]  }
   0xb   :  { %1118 = vmatpush1.bf16.msra.mxu0 %v2288_v5  ;;  %1004 = vmatprep.subr.bf16.mxu1 %v2319_v16  ;;  %v2310_v29 = vld [vmem:[%s3658_s1 + $0x194] ss:$8 sps:$4 sm:$0xff]   ;;  %v2343_v31 = vld [vmem:[%s3658_s1 + $0x64] ss:$8 sps:$4 sm:$0xff]   ;;  %v2312_v35 = vld [vmem:[%s3658_s1 + $0x190] ss:$8 sps:$4 sm:$0xff]  }
   0xc   :  { %1119 = vmatprep.subr.bf16.mxu0 %v2289_v6  ;;  %v31_v32 = vld [vmem:[%s3659_s0 + $0x18] sm:$0xff]  ;;  %v2316_v36 = vld [vmem:[%s3658_s1 + $0x1a4] ss:$8 sps:$4 sm:$0xff]   ;;  %v2345_v37 = vld [vmem:[%s3658_s1 + $0x60] ss:$8 sps:$4 sm:$0xff]  }
   0xd   :  { %v39_v33 = vld [vmem:[%s3659_s0 + $0x58] sm:$0xff]  ;;  %v2318_v39 = vld [vmem:[%s3658_s1 + $0x1a0] ss:$8 sps:$4 sm:$0xff]   ;;  %v2355_v42 = vld [vmem:[%s3658_s1 + $0x84] ss:$8 sps:$4 sm:$0xff]  }
   0xe   :  { %1005 = vmatpush1.bf16.msra.mxu1 %v2321_v18  ;;  %v159_v34 = vpack.c.bf16 %v39_v33, %v31_v32  ;;  %v2349_v38 = vld [vmem:[%s3658_s1 + $0x74] ss:$8 sps:$4 sm:$0xff]   ;;  %v2351_v41 = vld [vmem:[%s3658_s1 + $0x70] ss:$8 sps:$4 sm:$0xff]   ;;  %v2328_v44 = vld [vmem:[%s3658_s1 + $0x1c4] ss:$8 sps:$4 sm:$0xff]  }
   0xf   :  { %1120 = vmatpush1.bf16.msra.mxu0 %v2291_v7  ;;  %1006 = vmatprep.subr.bf16.mxu1 %v2325_v19  ;;  %v2322_v40 = vld [vmem:[%s3658_s1 + $0x1b4] ss:$8 sps:$4 sm:$0xff]   ;;  %v2324_v43 = vld [vmem:[%s3658_s1 + $0x1b0] ss:$8 sps:$4 sm:$0xff]   ;;  %v2357_v45 = vld [vmem:[%s3658_s1 + $0x80] ss:$8 sps:$4 sm:$0xff]  }
  0x10   :  { %1121 = vmatprep.subr.bf16.mxu0 %v2292_v8  ;;  %1145 = vmatprep.mubr.bf16.mxu0 %v159_v34  ;;  %v2361_v46 = vld [vmem:[%s3658_s1 + $0x94] ss:$8 sps:$4 sm:$0xff]   ;;  %v2330_v47 = vld [vmem:[%s3658_s1 + $0x1c0] ss:$8 sps:$4 sm:$0xff]   ;;  %v2363_v49 = vld [vmem:[%s3658_s1 + $0x90] ss:$8 sps:$4 sm:$0xff]  }
  0x11   :  { %v2334_v48 = vld [vmem:[%s3658_s1 + $0x1d4] ss:$8 sps:$4 sm:$0xff]   ;;  %v2367_v50 = vld [vmem:[%s3658_s1 + $0xa4] ss:$8 sps:$4 sm:$0xff]   ;;  %v2336_v51 = vld [vmem:[%s3658_s1 + $0x1d0] ss:$8 sps:$4 sm:$0xff]  }
  0x12   :  { %1007 = vmatpush1.bf16.msra.mxu1 %v2327_v22  ;;  %v2369_v52 = vld [vmem:[%s3658_s1 + $0xa0] ss:$8 sps:$4 sm:$0xff]   ;;  %v2340_v53 = vld [vmem:[%s3658_s1 + $0x1e4] ss:$8 sps:$4 sm:$0xff]   ;;  %v2373_v54 = vld [vmem:[%s3658_s1 + $0xb4] ss:$8 sps:$4 sm:$0xff]  }
  0x13   :  { %1122 = vmatpush1.bf16.msra.mxu0 %v2294_v11  ;;  %1008 = vmatprep.subr.bf16.mxu1 %v2331_v23  ;;  %v2342_v55 = vld [vmem:[%s3658_s1 + $0x1e0] ss:$8 sps:$4 sm:$0xff]   ;;  %v2346_v56 = vld [vmem:[%s3658_s1 + $0x1f4] ss:$8 sps:$4 sm:$0xff]   ;;  %v2375_v57 = vld [vmem:[%s3658_s1 + $0xb0] ss:$8 sps:$4 sm:$0xff]  }
  0x14   :  { %1123 = vmatprep.subr.bf16.mxu0 %v2295_v14  ;;  %v2379_v58 = vld [vmem:[%s3658_s1 + $0xc4] ss:$8 sps:$4 sm:$0xff]   ;;  %v2348_v59 = vld [vmem:[%s3658_s1 + $0x1f0] ss:$8 sps:$4 sm:$0xff]   ;;  %v2381_v1 = vld [vmem:[%s3658_s1 + $0xc0] ss:$8 sps:$4 sm:$0xff]  }
  0x15   :  { %v30_v60 = vld [vmem:[%s3659_s0 + $0x10] sm:$0xff]  ;;  %v2354_v62 = vld [vmem:[%s3658_s1 + $0x204] ss:$8 sps:$4 sm:$0xff]   ;;  %v47_v63 = vld [vmem:[%s3659_s0 + $0x98] sm:$0xff] }
  0x16   :  { %1009 = vmatpush1.bf16.msra.mxu1 %v2333_v26  ;;  %v38_v61 = vld [vmem:[%s3659_s0 + $0x50] sm:$0xff]  ;;  %v55_v0 = vld [vmem:[%s3659_s0 + $0xd8] sm:$0xff]  ;;  %v29_v3 = vld [vmem:[%s3659_s0 + $0x8] sm:$0xff] }
  0x17   :  { %1124 = vmatpush1.bf16.msra.mxu0 %v2297_v15  ;;  %1010 = vmatprep.subr.bf16.mxu1 %v2337_v27  ;;  %v2385_v2 = vld [vmem:[%s3658_s1 + $0xd4] ss:$8 sps:$4 sm:$0xff]   ;;  %v37_v4 = vld [vmem:[%s3659_s0 + $0x48] sm:$0xff]  ;;  %v158_v5 = vpack.c.bf16 %v38_v61, %v30_v60  ;;  %v167_v9 = vpack.c.bf16 %v55_v0, %v47_v63  ;;  %v2387_v10 = vld [vmem:[%s3658_s1 + $0xd0] ss:$8 sps:$4 sm:$0xff]  }
  0x18   :  { %1125 = vmatprep.subr.bf16.mxu0 %v2298_v17  ;;  %v157_v6 = vpack.c.bf16 %v37_v4, %v29_v3  ;;  %v2352_v7 = vld [vmem:[%s3658_s1 + $0x200] ss:$8 sps:$4 sm:$0xff]   ;;  %v2360_v8 = vld [vmem:[%s3658_s1 + $0x214] ss:$8 sps:$4 sm:$0xff]   ;;  %v2391_v11 = vld [vmem:[%s3658_s1 + $0xe4] ss:$8 sps:$4 sm:$0xff]  }
  0x19   :  { %v2358_v12 = vld [vmem:[%s3658_s1 + $0x210] ss:$8 sps:$4 sm:$0xff]   ;;  %v2366_v15 = vld [vmem:[%s3658_s1 + $0x224] ss:$8 sps:$4 sm:$0xff]   ;;  %v2393_v18 = vld [vmem:[%s3658_s1 + $0xe0] ss:$8 sps:$4 sm:$0xff]  }
  0x1a   :  { %1011 = vmatpush1.bf16.msra.mxu1 %v2339_v30  ;;  %1032 = vmatprep.mubr.bf16.mxu1 %v157_v6  ;;  %v46_v13 = vld [vmem:[%s3659_s0 + $0x90] sm:$0xff]  ;;  %v63_v16 = vld [vmem:[%s3659_s0 + $0x118] sm:$0xff]  ;;  %v36_v26 = vld [vmem:[%s3659_s0 + $0x40] sm:$0xff] }
  0x1b   :  { %1126 = vmatpush1.bf16.msra.mxu0 %v2300_v20  ;;  %1012 = vmatprep.subr.bf16.mxu1 %v2343_v31  ;;  %v54_v14 = vld [vmem:[%s3659_s0 + $0xd0] sm:$0xff]  ;;  %v71_v17 = vld [vmem:[%s3659_s0 + $0x158] sm:$0xff]  ;;  %v45_v31 = vld [vmem:[%s3659_s0 + $0x88] sm:$0xff] }
  0x1c   :  { %1127 = vmatprep.subr.bf16.mxu0 %v2301_v21  ;;  %v2397_v19 = vld [vmem:[%s3658_s1 + $0xf4] ss:$8 sps:$4 sm:$0xff]   ;;  %v166_v20 = vpack.c.bf16 %v54_v14, %v46_v13  ;;  %v2364_v21 = vld [vmem:[%s3658_s1 + $0x220] ss:$8 sps:$4 sm:$0xff]   ;;  %v175_v23 = vpack.c.bf16 %v71_v17, %v63_v16  ;;  %v2370_v27 = vld [vmem:[%s3658_s1 + $0x230] ss:$8 sps:$4 sm:$0xff]  }
  0x1d   :  { %v2372_v22 = vld [vmem:[%s3658_s1 + $0x234] ss:$8 sps:$4 sm:$0xff]   ;;  %v53_v32 = vld [vmem:[%s3659_s0 + $0xc8] sm:$0xff]  ;;  %v2899_v0 = vld [vmem:[%s3658_s1 + $0x330] ss:$8 sps:$4 sm:$0xff]  }
  0x1e   :  { %1013 = vmatpush1.bf16.msra.mxu1 %v2345_v37  ;;  %v70_v30 = vld [vmem:[%s3659_s0 + $0x150] sm:$0xff]  ;;  %v2378_v33 = vld [vmem:[%s3658_s1 + $0x244] ss:$8 sps:$4 sm:$0xff]   ;;  %v79_v34 = vld [vmem:[%s3659_s0 + $0x198] sm:$0xff] }
  0x1f   :  { %1128 = vmatpush1.bf16.msra.mxu0 %v2303_v24  ;;  %1014 = vmatprep.subr.bf16.mxu1 %v2349_v38  ;;  %v2399_v24 = vld [vmem:[%s3658_s1 + $0xf0] ss:$8 sps:$4 sm:$0xff]   ;;  %v2822_v37 = vld [vmem:[%s3658_s1 + $0x300] ss:$8 sps:$4 sm:$0xff]   ;;  %v2828_v38 = vld [vmem:[%s3658_s1 + $0x314] ss:$8 sps:$4 sm:$0xff]  }
  0x20   :  { %1129 = vmatprep.subr.bf16.mxu0 %v2304_v25  ;;  %v28_v25 = vld [vmem:[%s3659_s0] sm:$0xff]  ;;  %v2394_v4 = vld [vmem:[%s3658_s1 + $0x270] ss:$8 sps:$4 sm:$0xff]   ;;  %v85_v6 = vld [vmem:[%s3659_s0 + $0x1c8] sm:$0xff] }
  0x21   :  { %v2388_v61 = vld [vmem:[%s3658_s1 + $0x260] ss:$8 sps:$4 sm:$0xff]   ;;  %v2912_v3 = vld [vmem:[%s3658_s1 + $0x344] ss:$8 sps:$4 sm:$0xff]   ;;  %v2948_v14 = vld [vmem:[%s3658_s1 + $0x354] ss:$8 sps:$4 sm:$0xff]  }
  0x22   :  { %1015 = vmatpush1.bf16.msra.mxu1 %v2351_v41  ;;  %v2376_v41 = vld [vmem:[%s3658_s1 + $0x240] ss:$8 sps:$4 sm:$0xff]  }
  0x23   :  { %1130 = vmatpush1.bf16.msra.mxu0 %v2306_v28  ;;  %1016 = vmatprep.subr.bf16.mxu1 %v2355_v42  ;;  %v62_v28 = vld [vmem:[%s3659_s0 + $0x110] sm:$0xff]  ;;  %v2942_v13 = vld [vmem:[%s3658_s1 + $0x340] ss:$8 sps:$4 sm:$0xff]  }
  0x24   :  { %1131 = vmatprep.subr.bf16.mxu0 %v2310_v29  ;;  %v2799_v29 = vld [vmem:[%s3658_s1 + $0x304] ss:$8 sps:$4 sm:$0xff]   ;;  %v2384_v42 = vld [vmem:[%s3658_s1 + $0x254] ss:$8 sps:$4 sm:$0xff]   ;;  %v2400_v17 = vld [vmem:[%s3658_s1 + $0x280] ss:$8 sps:$4 sm:$0xff]  }
  0x26   :  { %1017 = vmatpush1.bf16.msra.mxu1 %v2357_v45  ;;  %v44_v45 = vld [vmem:[%s3659_s0 + $0x80] sm:$0xff] }
  0x27   :  { %1132 = vmatpush1.bf16.msra.mxu0 %v2312_v35  ;;  %1018 = vmatprep.subr.bf16.mxu1 %v2361_v46  ;;  %v87_v35 = vld [vmem:[%s3659_s0 + $0x1d8] sm:$0xff]  ;;  %v52_v46 = vld [vmem:[%s3659_s0 + $0xc0] sm:$0xff] }
  0x28   :  { %1133 = vmatprep.subr.bf16.mxu0 %v2316_v36  ;;  %v156_v36 = vpack.c.bf16 %v36_v26, %v28_v25  ;;  %v118_v25 = vld [vmem:[%s3659_s0 + $0x2d0] sm:$0xff]  ;;  %v2981_v26 = vld [vmem:[%s3658_s1 + $0x364] ss:$8 sps:$4 sm:$0xff]  }
  0x2a   :  { %1019 = vmatpush1.bf16.msra.mxu1 %v2363_v49  ;;  %v2858_v49 = vld [vmem:[%s3658_s1 + $0x324] ss:$8 sps:$4 sm:$0xff]  }
  0x2b   :  { %1134 = vmatpush1.bf16.msra.mxu0 %v2318_v39  ;;  %1020 = vmatprep.subr.bf16.mxu1 %v2367_v50  ;;  %v165_v39 = vpack.c.bf16 %v53_v32, %v45_v31  ;;  %v86_v50 = vld [vmem:[%s3659_s0 + $0x1d0] sm:$0xff]  ;;  %v127_v31 = vld [vmem:[%s3659_s0 + $0x318] sm:$0xff] }
  0x2c   :  { %1135 = vmatprep.subr.bf16.mxu0 %v2322_v40  ;;  %v174_v40 = vpack.c.bf16 %v70_v30, %v62_v28  ;;  %v93_v28 = vld [vmem:[%s3659_s0 + $0x208] sm:$0xff]  ;;  %v135_v32 = vld [vmem:[%s3659_s0 + $0x358] sm:$0xff] }
  0x2d   :  { %v101_v30 = vld [vmem:[%s3659_s0 + $0x248] sm:$0xff] }
  0x2e   :  { %1021 = vmatpush1.bf16.msra.mxu1 %v2369_v52  ;;  %v69_v52 = vld [vmem:[%s3659_s0 + $0x148] sm:$0xff] }
  0x2f   :  { %1136 = vmatpush1.bf16.msra.mxu0 %v2324_v43  ;;  %1022 = vmatprep.subr.bf16.mxu1 %v2373_v54  ;;  %v183_v43 = vpack.c.bf16 %v87_v35, %v79_v34  ;;  %v95_v54 = vld [vmem:[%s3659_s0 + $0x218] sm:$0xff]  ;;  %v3002_v34 = vld [vmem:[%s3658_s1 + $0x360] ss:$8 sps:$4 sm:$0xff]  }
  0x30   :  { %1137 = vmatprep.subr.bf16.mxu0 %v2328_v44  ;;  %v2839_v44 = vld [vmem:[%s3658_s1 + $0x310] ss:$8 sps:$4 sm:$0xff]   ;;  %v3008_v35 = vld [vmem:[%s3658_s1 + $0x374] ss:$8 sps:$4 sm:$0xff]  }
  0x32   :  { %1023 = vmatpush1.bf16.msra.mxu1 %v2375_v57  ;;  %v2882_v57 = vld [vmem:[%s3658_s1 + $0x320] ss:$8 sps:$4 sm:$0xff]  }
  0x33   :  { %1138 = vmatpush1.bf16.msra.mxu0 %v2330_v47  ;;  %1024 = vmatprep.subr.bf16.mxu1 %v2379_v58  ;;  %v2382_v47 = vld [vmem:[%s3658_s1 + $0x250] ss:$8 sps:$4 sm:$0xff]   ;;  %v2888_v58 = vld [vmem:[%s3658_s1 + $0x334] ss:$8 sps:$4 sm:$0xff]  }
  0x34   :  { %1139 = vmatprep.subr.bf16.mxu0 %v2334_v48  ;;  %v78_v48 = vld [vmem:[%s3659_s0 + $0x190] sm:$0xff] }
  0x35   :  { %v182_v60 = vpack.c.bf16 %v86_v50, %v78_v48  ;;  %v2418_v48 = vld [vmem:[%s3658_s1 + $0x2b0] ss:$8 sps:$4 sm:$0xff]   ;;  %v109_v50 = vld [vmem:[%s3659_s0 + $0x288] sm:$0xff] }
  0x36   :  { %1025 = vmatpush1.bf16.msra.mxu1 %v2381_v1  ;;  %v60_v1 = vld [vmem:[%s3659_s0 + $0x100] sm:$0xff] }
  0x37   :  { %1140 = vmatpush1.bf16.msra.mxu0 %v2336_v51  ;;  %1026 = vmatprep.subr.bf16.mxu1 %v2385_v2  ;;  %v61_v51 = vld [vmem:[%s3659_s0 + $0x108] sm:$0xff]  ;;  %v68_v2 = vld [vmem:[%s3659_s0 + $0x140] sm:$0xff] }
  0x38   :  { %1141 = vmatprep.subr.bf16.mxu0 %v2340_v53  ;;  %v2390_v53 = vld [vmem:[%s3658_s1 + $0x264] ss:$8 sps:$4 sm:$0xff]  }
  0x3a   :  { %1027 = vmatpush1.bf16.msra.mxu1 %v2387_v10  ;;  %v172_v10 = vpack.c.bf16 %v68_v2, %v60_v1  ;;  %v2424_v1 = vld [vmem:[%s3658_s1 + $0x2c0] ss:$8 sps:$4 sm:$0xff]   ;;  %v2432_v2 = vld [vmem:[%s3658_s1 + $0x2d4] ss:$8 sps:$4 sm:$0xff]  }
  0x3b   :  { %1142 = vmatpush1.bf16.msra.mxu0 %v2342_v55  ;;  %1028 = vmatprep.subr.bf16.mxu1 %v2391_v11  ;;  %v103_v55 = vld [vmem:[%s3659_s0 + $0x258] sm:$0xff] }
  0x3c   :  { %1143 = vmatprep.subr.bf16.mxu0 %v2346_v56  ;;  %v164_v56 = vpack.c.bf16 %v52_v46, %v44_v45  ;;  %v191_v63 = vpack.c.bf16 %v103_v55, %v95_v54  ;;  %v111_v11 = vld [vmem:[%s3659_s0 + $0x298] sm:$0xff]  ;;  %v92_v45 = vld [vmem:[%s3659_s0 + $0x200] sm:$0xff] }
  0x3d   :  { %v100_v46 = vld [vmem:[%s3659_s0 + $0x240] sm:$0xff] }
  0x3e   :  { %1029 = vmatpush1.bf16.msra.mxu1 %v2393_v18  ;;  %v2408_v18 = vld [vmem:[%s3658_s1 + $0x294] ss:$8 sps:$4 sm:$0xff]   ;;  %v2426_v54 = vld [vmem:[%s3658_s1 + $0x2c4] ss:$8 sps:$4 sm:$0xff]   ;;  %v188_v55 = vpack.c.bf16 %v100_v46, %v92_v45 }
  0x3f   :  { %1144 = vmatpush1.bf16.msra.mxu0 %v2348_v59  ;;  %1030 = vmatprep.subr.bf16.mxu1 %v2397_v19  ;;  %v173_v59 = vpack.c.bf16 %v69_v52, %v61_v51  ;;  %v117_v51 = vld [vmem:[%s3659_s0 + $0x2c8] sm:$0xff]  ;;  %v126_v52 = vld [vmem:[%s3659_s0 + $0x310] sm:$0xff] }
  0x40   :  { %1226 = vmatprep.subr.bf16.mxu0 %v2354_v62  ;;  %v2396_v62 = vld [vmem:[%s3658_s1 + $0x274] ss:$8 sps:$4 sm:$0xff]   ;;  %v49_v46 = vld [vmem:[%s3659_s0 + $0xa8] sm:$0xff] }
  0x42   :  { %1146 = vmatmul.mubr.bf16.vlgmr.msra.gmra.mrb[0].mxu0 %v158_v5  ;;  %1031 = vmatpush1.bf16.msra.mxu1 %v2399_v24  ;;  %v77_v5 = vld [vmem:[%s3659_s0 + $0x188] sm:$0xff]  ;;  %v110_v24 = vld [vmem:[%s3659_s0 + $0x290] sm:$0xff] }
  0x43   :  { %1227 = vmatpush1.bf16.msra.mxu0 %v2352_v7  ;;  %1155 = vmatprep.mubr.bf16.mxu0 %v167_v9  ;;  %v94_v7 = vld [vmem:[%s3659_s0 + $0x210] sm:$0xff]  ;;  %v2402_v9 = vld [vmem:[%s3658_s1 + $0x284] ss:$8 sps:$4 sm:$0xff]  }
  0x44   :  { %1228 = vmatprep.subr.bf16.mxu0 %v2360_v8  ;;  %2117 = vmatprep.subr.bf16.mxu1 %v2799_v29  ;;  %v102_v8 = vld [vmem:[%s3659_s0 + $0x250] sm:$0xff] }
  0x45   :  { %1033 = vmatmul.mubr.bf16.vlgmr.msra.gmra.mrb[0].mxu1 %v156_v36  ;;  %v190_v16 = vpack.c.bf16 %v102_v8, %v94_v7  ;;  %v189_v36 = vpack.c.bf16 %v101_v30, %v93_v28  ;;  %v116_v7 = vld [vmem:[%s3659_s0 + $0x2c0] sm:$0xff]  ;;  %v3140_v30 = vld [vmem:[%s3658_s1 + $0x3b0] ss:$8 sps:$4 sm:$0xff]  }
  0x46   :  { %2133 = vmatpush1.bf16.msra.mxu1 %v2822_v37  ;;  %1042 = vmatprep.mubr.bf16.mxu1 %v165_v39  ;;  %v198_v39 = vpack.c.bf16 %v118_v25, %v110_v24  ;;  %v3092_v8 = vld [vmem:[%s3658_s1 + $0x3a4] ss:$8 sps:$4 sm:$0xff]   ;;  %v2436_v25 = vld [vmem:[%s3658_s1 + $0x2e0] ss:$8 sps:$4 sm:$0xff]  }
  0x47   :  { %1229 = vmatpush1.bf16.msra.mxu0 %v2358_v12  ;;  %2118 = vmatprep.subr.bf16.mxu1 %v2828_v38  ;;  %v119_v12 = vld [vmem:[%s3659_s0 + $0x2d8] sm:$0xff] }
  0x48   :  { %1230 = vmatprep.subr.bf16.mxu0 %v2366_v15  ;;  %v181_v15 = vpack.c.bf16 %v85_v6, %v77_v5  ;;  %v199_v19 = vpack.c.bf16 %v119_v12, %v111_v11  ;;  %v3080_v5 = vld [vmem:[%s3658_s1 + $0x390] ss:$8 sps:$4 sm:$0xff]   ;;  %v108_v6 = vld [vmem:[%s3659_s0 + $0x280] sm:$0xff]  ;;  %v133_v11 = vld [vmem:[%s3659_s0 + $0x348] sm:$0xff] }
  0x49   :  { %v142_v12 = vld [vmem:[%s3659_s0 + $0x390] sm:$0xff] }
  0x4a   :  { %1156 = vmatmul.mubr.bf16.gmra.mrb[4].mxu0 %v166_v20  ;;  %2134 = vmatpush1.bf16.msra.mxu1 %v2839_v44  ;;  %v2960_v20 = vld [vmem:[%s3658_s1 + $0x350] ss:$8 sps:$4 sm:$0xff]  }
  0x4b   :  { %1231 = vmatpush1.bf16.msra.mxu0 %v2364_v21  ;;  %1165 = vmatprep.mubr.bf16.mxu0 %v175_v23  ;;  %v76_v21 = vld [vmem:[%s3659_s0 + $0x180] sm:$0xff]  ;;  %v2406_v23 = vld [vmem:[%s3658_s1 + $0x290] ss:$8 sps:$4 sm:$0xff]  }
  0x4c   :  { %1232 = vmatprep.subr.bf16.mxu0 %v2372_v22  ;;  %2119 = vmatprep.subr.bf16.mxu1 %v2858_v49  ;;  %v84_v22 = vld [vmem:[%s3659_s0 + $0x1c0] sm:$0xff] }
  0x4d   :  { %1043 = vmatmul.mubr.bf16.gmra.mrb[4].mxu1 %v164_v56  ;;  %v143_v56 = vld [vmem:[%s3659_s0 + $0x398] sm:$0xff] }
  0x4e   :  { %2135 = vmatpush1.bf16.msra.mxu1 %v2882_v57  ;;  %1052 = vmatprep.mubr.bf16.mxu1 %v173_v59  ;;  %v151_v59 = vld [vmem:[%s3659_s0 + $0x3d8] sm:$0xff] }
  0x4f   :  { %1233 = vmatpush1.bf16.msra.mxu0 %v2370_v27  ;;  %2120 = vmatprep.subr.bf16.mxu1 %v2888_v58  ;;  %v2414_v27 = vld [vmem:[%s3658_s1 + $0x2a4] ss:$8 sps:$4 sm:$0xff]  }
  0x50   :  { %1234 = vmatprep.subr.bf16.mxu0 %v2378_v33  ;;  %v180_v33 = vpack.c.bf16 %v84_v22, %v76_v21  ;;  %v3122_v21 = vld [vmem:[%s3658_s1 + $0x3a0] ss:$8 sps:$4 sm:$0xff]   ;;  %v3128_v22 = vld [vmem:[%s3658_s1 + $0x3b4] ss:$8 sps:$4 sm:$0xff]  }
  0x52   :  { %1166 = vmatmul.mubr.bf16.gmra.mrb[8].mxu0 %v174_v40  ;;  %2136 = vmatpush1.bf16.msra.mxu1 %v2899_v0  ;;  %v2412_v40 = vld [vmem:[%s3658_s1 + $0x2a0] ss:$8 sps:$4 sm:$0xff]  }
  0x53   :  { %1235 = vmatpush1.bf16.msra.mxu0 %v2376_v41  ;;  %1175 = vmatprep.mubr.bf16.mxu0 %v183_v43  ;;  %v2420_v41 = vld [vmem:[%s3658_s1 + $0x2b4] ss:$8 sps:$4 sm:$0xff]   ;;  %v3019_v43 = vld [vmem:[%s3658_s1 + $0x370] ss:$8 sps:$4 sm:$0xff]  }
  0x54   :  { %1236 = vmatprep.subr.bf16.mxu0 %v2384_v42  ;;  %2121 = vmatprep.subr.bf16.mxu1 %v2912_v3  ;;  %v207_v42 = vpack.c.bf16 %v135_v32, %v127_v31  ;;  %v124_v31 = vld [vmem:[%s3659_s0 + $0x300] sm:$0xff] }
  0x55   :  { %1053 = vmatmul.mubr.bf16.gmra.mrb[8].mxu1 %v172_v10  ;;  %v125_v10 = vld [vmem:[%s3659_s0 + $0x308] sm:$0xff]  ;;  %v132_v32 = vld [vmem:[%s3659_s0 + $0x340] sm:$0xff] }
  0x56   :  { %2137 = vmatpush1.bf16.msra.mxu1 %v2942_v13  ;;  %1062 = vmatprep.mubr.bf16.mxu1 %v181_v15  ;;  %v150_v15 = vld [vmem:[%s3659_s0 + $0x3d0] sm:$0xff]  ;;  %v204_v45 = vpack.c.bf16 %v132_v32, %v124_v31  ;;  %v131_v31 = vld [vmem:[%s3659_s0 + $0x338] sm:$0xff]  ;;  %v88_v32 = vld [vmem:[%s3659_s0 + $0x1e0] sm:$0xff] }
  0x57   :  { %1237 = vmatpush1.bf16.msra.mxu0 %v2382_v47  ;;  %2122 = vmatprep.subr.bf16.mxu1 %v2948_v14  ;;  %v3032_v47 = vld [vmem:[%s3658_s1 + $0x384] ss:$8 sps:$4 sm:$0xff]   ;;  %v214_v24 = vpack.c.bf16 %v150_v15, %v142_v12  ;;  %v3244_v12 = vld [vmem:[%s3658_s1 + $0x3f0] ss:$8 sps:$4 sm:$0xff]  }
  0x58   :  { %1238 = vmatprep.subr.bf16.mxu0 %v2390_v53  ;;  %v134_v53 = vld [vmem:[%s3659_s0 + $0x350] sm:$0xff] }
  0x59   :  { %v98_v15 = vld [vmem:[%s3659_s0 + $0x230] sm:$0xff] }
  0x5a   :  { %1176 = vmatmul.mubr.bf16.gmra.mrb[12].mxu0 %v182_v60  ;;  %2138 = vmatpush1.bf16.msra.mxu1 %v2960_v20  ;;  %v3062_v60 = vld [vmem:[%s3658_s1 + $0x380] ss:$8 sps:$4 sm:$0xff]  }
  0x5b   :  { %1239 = vmatpush1.bf16.msra.mxu0 %v2388_v61  ;;  %1185 = vmatprep.mubr.bf16.mxu0 %v191_v63  ;;  %v3068_v61 = vld [vmem:[%s3658_s1 + $0x394] ss:$8 sps:$4 sm:$0xff]   ;;  %v206_v63 = vpack.c.bf16 %v134_v53, %v126_v52 }
  0x5c   :  { %1240 = vmatprep.subr.bf16.mxu0 %v2396_v62  ;;  %2123 = vmatprep.subr.bf16.mxu1 %v2981_v26  ;;  %v197_v62 = vpack.c.bf16 %v117_v51, %v109_v50  ;;  %v3179_v50 = vld [vmem:[%s3658_s1 + $0x3c0] ss:$8 sps:$4 sm:$0xff]   ;;  %v3185_v51 = vld [vmem:[%s3658_s1 + $0x3d4] ss:$8 sps:$4 sm:$0xff]  }
  0x5d   :  { %1063 = vmatmul.mubr.bf16.gmra.mrb[12].mxu1 %v180_v33  ;;  %v3152_v33 = vld [vmem:[%s3658_s1 + $0x3c4] ss:$8 sps:$4 sm:$0xff]  }
  0x5e   :  { %2139 = vmatpush1.bf16.msra.mxu1 %v3002_v34  ;;  %1072 = vmatprep.mubr.bf16.mxu1 %v189_v36  ;;  %v141_v36 = vld [vmem:[%s3659_s0 + $0x388] sm:$0xff] }
  0x5f   :  { %1241 = vmatpush1.bf16.msra.mxu0 %v2394_v4  ;;  %2124 = vmatprep.subr.bf16.mxu1 %v3008_v35  ;;  %v215_v4 = vpack.c.bf16 %v151_v59, %v143_v56  ;;  %v140_v56 = vld [vmem:[%s3659_s0 + $0x380] sm:$0xff] }
  0x60   :  { %1242 = vmatprep.subr.bf16.mxu0 %v2402_v9  ;;  %v2430_v9 = vld [vmem:[%s3658_s1 + $0x2d0] ss:$8 sps:$4 sm:$0xff]   ;;  %v148_v59 = vld [vmem:[%s3659_s0 + $0x3c0] sm:$0xff] }
  0x62   :  { %1186 = vmatmul.mubr.bf16.gmra.mrb[16].mxu0 %v190_v16  ;;  %2140 = vmatpush1.bf16.msra.mxu1 %v3019_v43  ;;  %v2438_v16 = vld [vmem:[%s3658_s1 + $0x2e4] ss:$8 sps:$4 sm:$0xff]  }
  0x63   :  { %1243 = vmatpush1.bf16.msra.mxu0 %v2400_v17  ;;  %1195 = vmatprep.mubr.bf16.mxu0 %v199_v19  ;;  %v196_v17 = vpack.c.bf16 %v116_v7, %v108_v6  ;;  %v41_v19 = vld [vmem:[%s3659_s0 + $0x68] sm:$0xff] }
  0x64   :  { %1244 = vmatprep.subr.bf16.mxu0 %v2408_v18  ;;  %2125 = vmatprep.subr.bf16.mxu1 %v3032_v47  ;;  %v33_v18 = vld [vmem:[%s3659_s0 + $0x28] sm:$0xff] }
  0x65   :  { %1073 = vmatmul.mubr.bf16.gmra.mrb[16].mxu1 %v188_v55  ;;  %v161_v28 = vpack.c.bf16 %v41_v19, %v33_v18  ;;  %v3192_v55 = vld [vmem:[%s3658_s1 + $0x3d0] ss:$8 sps:$4 sm:$0xff]   ;;  %v65_v6 = vld [vmem:[%s3659_s0 + $0x128] sm:$0xff]  ;;  %v72_v18 = vld [vmem:[%s3659_s0 + $0x160] sm:$0xff] }
  0x66   :  { %2141 = vmatpush1.bf16.msra.mxu1 %v3062_v60  ;;  %1082 = vmatprep.mubr.bf16.mxu1 %v197_v62  ;;  %v99_v62 = vld [vmem:[%s3659_s0 + $0x238] sm:$0xff]  ;;  %v3230_v7 = vld [vmem:[%s3658_s1 + $0x3e0] ss:$8 sps:$4 sm:$0xff]  }
  0x67   :  { %1245 = vmatpush1.bf16.msra.mxu0 %v2406_v23  ;;  %2126 = vmatprep.subr.bf16.mxu1 %v3068_v61  ;;  %v205_v23 = vpack.c.bf16 %v133_v11, %v125_v10 }
  0x68   :  { %1246 = vmatprep.subr.bf16.mxu0 %v2414_v27  ;;  %v2444_v27 = vld [vmem:[%s3658_s1 + $0x2f4] ss:$8 sps:$4 sm:$0xff]  }
  0x6a   :  { %1196 = vmatmul.mubr.bf16.gmra.mrb[20].mxu0 %v198_v39  ;;  %2142 = vmatpush1.bf16.msra.mxu1 %v3080_v5  ;;  %v149_v39 = vld [vmem:[%s3659_s0 + $0x3c8] sm:$0xff] }
  0x6b   :  { %1247 = vmatpush1.bf16.msra.mxu0 %v2412_v40  ;;  %1205 = vmatprep.mubr.bf16.mxu0 %v207_v42  ;;  %v2442_v40 = vld [vmem:[%s3658_s1 + $0x2f0] ss:$8 sps:$4 sm:$0xff]   ;;  %v40_v42 = vld [vmem:[%s3659_s0 + $0x60] sm:$0xff]  ;;  %v213_v52 = vpack.c.bf16 %v149_v39, %v141_v36  ;;  %v97_v39 = vld [vmem:[%s3659_s0 + $0x228] sm:$0xff] }
  0x6c   :  { %1248 = vmatprep.subr.bf16.mxu0 %v2420_v41  ;;  %2127 = vmatprep.subr.bf16.mxu1 %v3092_v8  ;;  %v32_v41 = vld [vmem:[%s3659_s0 + $0x20] sm:$0xff] }
  0x6d   :  { %1083 = vmatmul.mubr.bf16.gmra.mrb[20].mxu1 %v196_v17  ;;  %v160_v53 = vpack.c.bf16 %v40_v42, %v32_v41  ;;  %v64_v17 = vld [vmem:[%s3659_s0 + $0x120] sm:$0xff] }
  0x6e   :  { %2143 = vmatpush1.bf16.msra.mxu1 %v3122_v21  ;;  %1092 = vmatprep.mubr.bf16.mxu1 %v205_v23  ;;  %v81_v23 = vld [vmem:[%s3659_s0 + $0x1a8] sm:$0xff] }
  0x6f   :  { %1249 = vmatpush1.bf16.msra.mxu0 %v2418_v48  ;;  %2128 = vmatprep.subr.bf16.mxu1 %v3128_v22  ;;  %v57_v48 = vld [vmem:[%s3659_s0 + $0xe8] sm:$0xff] }
  0x70   :  { %1250 = vmatprep.subr.bf16.mxu0 %v2426_v54  ;;  %v169_v54 = vpack.c.bf16 %v57_v48, %v49_v46  ;;  %v147_v46 = vld [vmem:[%s3659_s0 + $0x3b8] sm:$0xff]  ;;  %v104_v48 = vld [vmem:[%s3659_s0 + $0x260] sm:$0xff] }
  0x72   :  { %1206 = vmatmul.mubr.bf16.gmra.mrb[24].mxu0 %v206_v63  ;;  %2144 = vmatpush1.bf16.msra.mxu1 %v3140_v30  ;;  %v107_v63 = vld [vmem:[%s3659_s0 + $0x278] sm:$0xff] }
  0x73   :  { %1251 = vmatpush1.bf16.msra.mxu0 %v2424_v1  ;;  %1215 = vmatprep.mubr.bf16.mxu0 %v215_v4  ;;  %v48_v1 = vld [vmem:[%s3659_s0 + $0xa0] sm:$0xff]  ;;  %v212_v4 = vpack.c.bf16 %v148_v59, %v140_v56 }
  0x74   :  { %1252 = vmatprep.subr.bf16.mxu0 %v2432_v2  ;;  %2129 = vmatprep.subr.bf16.mxu1 %v3152_v33  ;;  %v56_v2 = vld [vmem:[%s3659_s0 + $0xe0] sm:$0xff] }
  0x75   :  { %1093 = vmatmul.mubr.bf16.gmra.mrb[24].mxu1 %v204_v45  ;;  %v168_v10 = vpack.c.bf16 %v56_v2, %v48_v1  ;;  %v138_v45 = vld [vmem:[%s3659_s0 + $0x370] sm:$0xff]  ;;  %v129_v1 = vld [vmem:[%s3659_s0 + $0x328] sm:$0xff] }
  0x76   :  { %2145 = vmatpush1.bf16.msra.mxu1 %v3179_v50  ;;  %1102 = vmatprep.mubr.bf16.mxu1 %v213_v52 }
  0x77   :  { %1253 = vmatpush1.bf16.msra.mxu0 %v2430_v9  ;;  %2130 = vmatprep.subr.bf16.mxu1 %v3185_v51  ;;  %v195_v9 = vpack.c.bf16 %v107_v63, %v99_v62  ;;  %v154_v62 = vld [vmem:[%s3659_s0 + $0x3f0] sm:$0xff] }
  0x78   :  { %1254 = vmatprep.subr.bf16.mxu0 %v2438_v16  ;;  %v106_v16 = vld [vmem:[%s3659_s0 + $0x270] sm:$0xff] }
  0x79   :  { %v194_v19 = vpack.c.bf16 %v106_v16, %v98_v15  ;;  %v50_v16 = vld [vmem:[%s3659_s0 + $0xb0] sm:$0xff] }
  0x7a   :  { %1216 = vmatmul.mubr.bf16.gmra.mrb[28].mxu0 %v214_v24  ;;  %2146 = vmatpush1.bf16.msra.mxu1 %v3192_v55 }
  0x7b   :  { %1255 = vmatpush1.bf16.msra.mxu0 %v2436_v25  ;;  %1258 = vmatprep.mubr.bf16.mxu0 %v161_v28  ;;  %v176_v25 = vpack.c.bf16 %v72_v18, %v64_v17  ;;  %v122_v28 = vld [vmem:[%s3659_s0 + $0x2f0] sm:$0xff] }
  0x7c   :  { %1256 = vmatprep.subr.bf16.mxu0 %v2444_v27  ;;  %v66_v18 = vld [vmem:[%s3659_s0 + $0x130] sm:$0xff] }
  0x7d   :  { %1103 = vmatmul.mubr.bf16.gmra.mrb[28].mxu1 %v212_v4 }
  0x7e   :  { %1411 = vmatprep.mubr.bf16.mxu1 %v195_v9  ;;  %v152_v9 = vld [vmem:[%s3659_s0 + $0x3e0] sm:$0xff] }
  0x7f   :  { %1257 = vmatpush1.bf16.msra.mxu0 %v2442_v40 }
  0x80   :  { %1339 = vmatprep.subr.bf16.mxu0 %v2799_v29  ;;  %v3204_v29 = vld [vmem:[%s3658_s1 + $0x3e4] ss:$8 sps:$4 sm:$0xff]  }
  0x81   :  { %2131 = vmatprep.subr.bf16.mxu1 %v3204_v29 }
  0x82   :  { %1259 = vmatmul.mubr.bf16.vlgmr.msra.gmra.mrb[0].mxu0 %v160_v53  ;;  %2147 = vmatpush1.bf16.msra.mxu1 %v3230_v7  ;;  %v113_v53 = vld [vmem:[%s3659_s0 + $0x2a8] sm:$0xff] }
  0x83   :  { %1340 = vmatpush1.bf16.msra.mxu0 %v2822_v37  ;;  %1268 = vmatprep.mubr.bf16.mxu0 %v169_v54  ;;  %v73_v37 = vld [vmem:[%s3659_s0 + $0x168] sm:$0xff] }
  0x84   :  { %1341 = vmatprep.subr.bf16.mxu0 %v2828_v38  ;;  %v3236_v38 = vld [vmem:[%s3658_s1 + $0x3f4] ss:$8 sps:$4 sm:$0xff]   ;;  %v177_v11 = vpack.c.bf16 %v73_v37, %v65_v6  ;;  %v136_v6 = vld [vmem:[%s3659_s0 + $0x360] sm:$0xff] }
  0x85   :  { %2132 = vmatprep.subr.bf16.mxu1 %v3236_v38 }
  0x86   :  { %2148 = vmatpush1.bf16.msra.mxu1 %v3244_v12 }
  0x87   :  { %1342 = vmatpush1.bf16.msra.mxu0 %v2839_v44  ;;  %v115_v44 = vld [vmem:[%s3659_s0 + $0x2b8] sm:$0xff] }
  0x88   :  { %1343 = vmatprep.subr.bf16.mxu0 %v2858_v49  ;;  %v123_v49 = vld [vmem:[%s3659_s0 + $0x2f8] sm:$0xff] }
  0x89   :  { %v203_v24 = vpack.c.bf16 %v123_v49, %v115_v44  ;;  %1412 = vmatmul.mubr.bf16.vlgmr.msra.gmra.mrb[32].mxu1 %v194_v19  ;;  %v67_v44 = vld [vmem:[%s3659_s0 + $0x138] sm:$0xff]  ;;  %v74_v19 = vld [vmem:[%s3659_s0 + $0x170] sm:$0xff] }
  0x8a   :  { %1269 = vmatmul.mubr.bf16.gmra.mrb[4].mxu0 %v168_v10  ;;  %v75_v49 = vld [vmem:[%s3659_s0 + $0x178] sm:$0xff] }
  0x8b   :  { %1344 = vmatpush1.bf16.msra.mxu0 %v2882_v57  ;;  %1278 = vmatprep.mubr.bf16.mxu0 %v177_v11  ;;  %v89_v57 = vld [vmem:[%s3659_s0 + $0x1e8] sm:$0xff]  ;;  %v42_v11 = vld [vmem:[%s3659_s0 + $0x70] sm:$0xff]  ;;  %v179_v17 = vpack.c.bf16 %v75_v49, %v67_v44 }
  0x8c   :  { %1345 = vmatprep.subr.bf16.mxu0 %v2888_v58  ;;  %v185_v27 = vpack.c.bf16 %v89_v57, %v81_v23  ;;  %1421 = vmatprep.mubr.bf16.mxu1 %v203_v24  ;;  %v114_v58 = vld [vmem:[%s3659_s0 + $0x2b0] sm:$0xff]  ;;  %v83_v23 = vld [vmem:[%s3659_s0 + $0x1b8] sm:$0xff]  ;;  %v178_v24 = vpack.c.bf16 %v74_v19, %v66_v18  ;;  %v348_v19 = vld [vmem:[%s3661_s2] sm:$0x3] }
  0x8d   :  { %v202_v36 = vpack.c.bf16 %v122_v28, %v114_v58  ;;  %v91_v57 = vld [vmem:[%s3659_s0 + $0x1f8] sm:$0xff]  ;;  %v90_v58 = vld [vmem:[%s3659_s0 + $0x1f0] sm:$0xff] }
  0x8f   :  { %1346 = vmatpush1.bf16.msra.mxu0 %v2899_v0  ;;  %v139_v0 = vld [vmem:[%s3659_s0 + $0x378] sm:$0xff] }
  0x90   :  { %1347 = vmatprep.subr.bf16.mxu0 %v2912_v3  ;;  %v80_v3 = vld [vmem:[%s3659_s0 + $0x1a0] sm:$0xff]  ;;  %v211_v40 = vpack.c.bf16 %v139_v0, %v131_v31 }
  0x91   :  { %v184_v41 = vpack.c.bf16 %v88_v32, %v80_v3  ;;  %1422 = vmatmul.mubr.bf16.gmra.mrb[36].mxu1 %v202_v36  ;;  %v2472_v31 = vld [vmem:[%s3660_s3 + $0x40] sm:$0xff]   ;;  %v2474_v3 = vld [vmem:[%s3660_s3 + $0x48] sm:$0xff]   ;;  %v2476_v36 = vld [vmem:[%s3660_s3 + $0x50] sm:$0xff]  }
  0x92   :  { %1279 = vmatmul.mubr.bf16.gmra.mrb[8].mxu0 %v176_v25  ;;  %1431 = vmatprep.mubr.bf16.mxu1 %v211_v40  ;;  %v187_v25 = vpack.c.bf16 %v91_v57, %v83_v23  ;;  %v2473_v0 = vld [vmem:[%s3660_s3] sm:$0xff]   ;;  %v2475_v32 = vld [vmem:[%s3660_s3 + $0x8] sm:$0xff]   ;;  %v2479_v40 = vld [vmem:[%s3660_s3 + $0x18] sm:$0xff]  }
  0x93   :  { %1348 = vmatpush1.bf16.msra.mxu0 %v2942_v13  ;;  %1288 = vmatprep.mubr.bf16.mxu0 %v185_v27  ;;  %v105_v13 = vld [vmem:[%s3659_s0 + $0x268] sm:$0xff]  ;;  %v82_v27 = vld [vmem:[%s3659_s0 + $0x1b0] sm:$0xff] }
  0x94   :  { %1349 = vmatprep.subr.bf16.mxu0 %v2948_v14  ;;  %v193_v42 = vpack.c.bf16 %v105_v13, %v97_v39  ;;  %v130_v14 = vld [vmem:[%s3659_s0 + $0x330] sm:$0xff]  ;;  %v186_v28 = vpack.c.bf16 %v90_v58, %v82_v27  ;;  %1977 = vmatprep.subr.bf16.mxu1 %v2472_v31  ;;  %v2478_v13 = vld [vmem:[%s3660_s3 + $0x58] sm:$0xff]  }
  0x95   :  { %v210_v52 = vpack.c.bf16 %v138_v45, %v130_v14  ;;  %1978 = vmatpush3.bf16.msra.mxu1 %v2473_v0  ;;  %v2477_v39 = vld [vmem:[%s3660_s3 + $0x10] sm:$0xff]   ;;  %v2482_v14 = vld [vmem:[%s3660_s3 + $0x68] sm:$0xff]  }
  0x96   :  { %1979 = vmatprep.subr.bf16.mxu1 %v2474_v3  ;;  %v2483_v45 = vld [vmem:[%s3660_s3 + $0x28] sm:$0xff]  }
  0x97   :  { %1350 = vmatpush1.bf16.msra.mxu0 %v2960_v20  ;;  %v155_v20 = vld [vmem:[%s3659_s0 + $0x3f8] sm:$0xff] }
  0x98   :  { %1351 = vmatprep.subr.bf16.mxu0 %v2981_v26  ;;  %v96_v26 = vld [vmem:[%s3659_s0 + $0x220] sm:$0xff]  ;;  %v219_v54 = vpack.c.bf16 %v155_v20, %v147_v46  ;;  %v2484_v46 = vld [vmem:[%s3660_s3 + $0x70] sm:$0xff]  }
  0x99   :  { %v192_v56 = vpack.c.bf16 %v104_v48, %v96_v26  ;;  %1432 = vmatmul.mubr.bf16.gmra.mrb[40].mxu1 %v210_v52  ;;  %v2485_v20 = vld [vmem:[%s3660_s3 + $0x30] sm:$0xff]   ;;  %v2486_v26 = vld [vmem:[%s3660_s3 + $0x78] sm:$0xff]  }
  0x9a   :  { %1289 = vmatmul.mubr.bf16.gmra.mrb[12].mxu0 %v184_v41  ;;  %1441 = vmatprep.mubr.bf16.mxu1 %v219_v54  ;;  %v2480_v41 = vld [vmem:[%s3660_s3 + $0x60] sm:$0xff]   ;;  %v2487_v48 = vld [vmem:[%s3660_s3 + $0x38] sm:$0xff]  }
  0x9b   :  { %1352 = vmatpush1.bf16.msra.mxu0 %v3002_v34  ;;  %1298 = vmatprep.mubr.bf16.mxu0 %v193_v42  ;;  %v121_v34 = vld [vmem:[%s3659_s0 + $0x2e8] sm:$0xff]  ;;  %v2481_v42 = vld [vmem:[%s3660_s3 + $0x20] sm:$0xff]  }
  0x9c   :  { %1353 = vmatprep.subr.bf16.mxu0 %v3008_v35  ;;  %v201_v59 = vpack.c.bf16 %v121_v34, %v113_v53  ;;  %v146_v35 = vld [vmem:[%s3659_s0 + $0x3b0] sm:$0xff]  ;;  %1980 = vmatpush3.bf16.msra.mxu1 %v2475_v32 }
  0x9d   :  { %v218_v63 = vpack.c.bf16 %v154_v62, %v146_v35  ;;  %1981 = vmatprep.subr.bf16.mxu1 %v2476_v36 }
  0x9f   :  { %1354 = vmatpush1.bf16.msra.mxu0 %v3019_v43  ;;  %v112_v43 = vld [vmem:[%s3659_s0 + $0x2a0] sm:$0xff] }
  0xa0   :  { %1355 = vmatprep.subr.bf16.mxu0 %v3032_v47  ;;  %v120_v47 = vld [vmem:[%s3659_s0 + $0x2e0] sm:$0xff]  ;;  %1982 = vmatpush3.bf16.msra.mxu1 %v2477_v39 }
  0xa1   :  { %v200_v2 = vpack.c.bf16 %v120_v47, %v112_v43  ;;  %1442 = vmatmul.mubr.bf16.gmra.mrb[44].mxu1 %v218_v63  ;;  %1983 = vmatprep.subr.bf16.mxu1 %v2478_v13 }
  0xa2   :  { %1299 = vmatmul.mubr.bf16.gmra.mrb[16].mxu0 %v192_v56 }
  0xa3   :  { %1356 = vmatpush1.bf16.msra.mxu0 %v3062_v60  ;;  %1308 = vmatprep.mubr.bf16.mxu0 %v201_v59  ;;  %v137_v60 = vld [vmem:[%s3659_s0 + $0x368] sm:$0xff] }
  0xa4   :  { %1357 = vmatprep.subr.bf16.mxu0 %v3068_v61  ;;  %v209_v4 = vpack.c.bf16 %v137_v60, %v129_v1  ;;  %v128_v61 = vld [vmem:[%s3659_s0 + $0x320] sm:$0xff]  ;;  %1984 = vmatpush3.bf16.msra.mxu1 %v2479_v40 }
  0xa5   :  { %1985 = vmatprep.subr.bf16.mxu1 %v2480_v41 }
  0xa7   :  { %1358 = vmatpush1.bf16.msra.mxu0 %v3080_v5  ;;  %v145_v5 = vld [vmem:[%s3659_s0 + $0x3a8] sm:$0xff] }
  0xa8   :  { %1359 = vmatprep.subr.bf16.mxu0 %v3092_v8  ;;  %v153_v8 = vld [vmem:[%s3659_s0 + $0x3e8] sm:$0xff]  ;;  %1986 = vmatpush3.bf16.msra.mxu1 %v2481_v42 }
  0xa9   :  { %v217_v37 = vpack.c.bf16 %v153_v8, %v145_v5  ;;  %1987 = vmatprep.subr.bf16.mxu1 %v2482_v14 }
  0xaa   :  { %1309 = vmatmul.mubr.bf16.gmra.mrb[20].mxu0 %v200_v2 }
  0xab   :  { %1360 = vmatpush1.bf16.msra.mxu0 %v3122_v21  ;;  %1318 = vmatprep.mubr.bf16.mxu0 %v209_v4  ;;  %v208_v21 = vpack.c.bf16 %v136_v6, %v128_v61 }
  0xac   :  { %1361 = vmatprep.subr.bf16.mxu0 %v3128_v22  ;;  %v144_v22 = vld [vmem:[%s3659_s0 + $0x3a0] sm:$0xff]  ;;  %1988 = vmatpush3.bf16.msra.mxu1 %v2483_v45 }
  0xad   :  { %1989 = vmatprep.subr.bf16.mxu1 %v2484_v46 }
  0xaf   :  { %1362 = vmatpush1.bf16.msra.mxu0 %v3140_v30  ;;  %v35_v30 = vld [vmem:[%s3659_s0 + $0x38] sm:$0xff] }
  0xb0   :  { %1363 = vmatprep.subr.bf16.mxu0 %v3152_v33  ;;  %v43_v33 = vld [vmem:[%s3659_s0 + $0x78] sm:$0xff]  ;;  %1990 = vmatpush3.bf16.msra.mxu1 %v2485_v20 }
  0xb1   :  { %v163_v10 = vpack.c.bf16 %v43_v33, %v35_v30  ;;  %1991 = vmatprep.subr.bf16.mxu1 %v2486_v26 }
  0xb2   :  { %1319 = vmatmul.mubr.bf16.gmra.mrb[24].mxu0 %v208_v21 }
  0xb3   :  { %1364 = vmatpush1.bf16.msra.mxu0 %v3179_v50  ;;  %1328 = vmatprep.mubr.bf16.mxu0 %v217_v37  ;;  %v216_v50 = vpack.c.bf16 %v152_v9, %v144_v22 }
  0xb4   :  { %1365 = vmatprep.subr.bf16.mxu0 %v3185_v51  ;;  %v34_v51 = vld [vmem:[%s3659_s0 + $0x30] sm:$0xff]  ;;  %1992 = vmatpush3.bf16.msra.mxu1 %v2487_v48 }
  0xb7   :  { %1366 = vmatpush1.bf16.msra.mxu0 %v3192_v55  ;;  %v51_v55 = vld [vmem:[%s3659_s0 + $0xb8] sm:$0xff] }
  0xb8   :  { %1367 = vmatprep.subr.bf16.mxu0 %v3204_v29  ;;  %v59_v29 = vld [vmem:[%s3659_s0 + $0xf8] sm:$0xff] }
  0xb9   :  { %v171_v15 = vpack.c.bf16 %v59_v29, %v51_v55 }
  0xba   :  { %1329 = vmatmul.mubr.bf16.gmra.mrb[28].mxu0 %v216_v50 }
  0xbb   :  { %1368 = vmatpush1.bf16.msra.mxu0 %v3230_v7  ;;  %1371 = vmatprep.mubr.bf16.mxu0 %v163_v10  ;;  %v162_v7 = vpack.c.bf16 %v42_v11, %v34_v51 }
  0xbc   :  { %1369 = vmatprep.subr.bf16.mxu0 %v3236_v38  ;;  %v58_v38 = vld [vmem:[%s3659_s0 + $0xf0] sm:$0xff] }
  0xbf   :  { %1370 = vmatpush1.bf16.msra.mxu0 %v3244_v12  ;;  %v170_v12 = vpack.c.bf16 %v58_v38, %v50_v16 }
  0xc2   :  { %1372 = vmatmul.mubr.bf16.vlgmr.msra.gmra.mrb[0].mxu0 %v162_v7 }
  0xc3   :  { %1381 = vmatprep.mubr.bf16.mxu0 %v171_v15  ;;  %v350_v15 = vlaneseq }
  0xca   :  { %1382 = vmatmul.mubr.bf16.gmra.mrb[4].mxu0 %v170_v12  ;;  %v351_v12 = vshrl.u32 %v350_v15, 7 }
  0xcb   :  { %1391 = vmatprep.mubr.bf16.mxu0 %v179_v17 }
  0xcc   :  { %v352_v17 = vsub.s32 0, %v351_v12  ;;  %v356_v23 = vsub.s32 1, %v351_v12 }
  0xce   :  { %v3530_v27 = vrot.slane %v348_v19, %v352_v17  ;;  %v3532_v58 = vrot.slane %v348_v19, %v356_v23 }
  0xd2   :  { %1392 = vmatmul.mubr.bf16.gmra.mrb[8].mxu0 %v178_v24 }
  0xd3   :  { %1401 = vmatprep.mubr.bf16.mxu0 %v187_v25 }
  0xda   :  { %1402 = vmatmul.mubr.bf16.gmra.mrb[12].mxu0 %v186_v28 }
 0x118   :  { %v3479_v52 = vpop.f32.mrb[0].mxu1 }
 0x119   :  { %v3481_v53 = vpop.f32.mrb[1].mxu1 }
 0x11a   :  { %v3483_v34 = vpop.f32.mrb[2].mxu1 }
 0x11b   :  { %v3485_v54 = vpop.f32.mrb[3].mxu1 }
 0x120   :  { %v3487_v56 = vpop.f32.mrb[4].mxu1 }
 0x121   :  { %v3489_v59 = vpop.f32.mrb[5].mxu1 }
 0x122   :  { %v3491_v35 = vpop.f32.mrb[6].mxu1 }
 0x123   :  { %v3493_v62 = vpop.f32.mrb[7].mxu1 }
 0x128   :  { %v3495_v43 = vpop.f32.mrb[8].mxu1 }
 0x129   :  { %v3497_v47 = vpop.f32.mrb[9].mxu1 }
 0x12a   :  { %v3499_v63 = vpop.f32.mrb[10].mxu1 }
 0x12b   :  { %v3501_v1 = vpop.f32.mrb[11].mxu1 }
 0x130   :  { %v3503_v60 = vpop.f32.mrb[12].mxu1 }
 0x131   :  { %v3505_v2 = vpop.f32.mrb[13].mxu1 }
 0x132   :  { %v3507_v4 = vpop.f32.mrb[14].mxu1 }
 0x133   :  { %v3509_v61 = vpop.f32.mrb[15].mxu1 }
 0x138   :  { %v1074_v6 = vpop.f32.mrb[16].mxu1 }
 0x139   :  { %v1076_v5 = vpop.f32.mrb[17].mxu1  ;;  %v1075_v28 = vadd.f32 %v1074_v6, %v3530_v27 }
 0x13a   :  { %v1078_v8 = vpop.f32.mrb[18].mxu1  ;;  %v1077_v0 = vadd.f32 %v1076_v5, %v3532_v58 }
 0x13b   :  { %v1080_v21 = vpop.f32.mrb[19].mxu1  ;;  %v1079_v32 = vadd.f32 %v1078_v8, %v3530_v27 }
 0x13c   :  { %v1081_v39 = vadd.f32 %v1080_v21, %v3532_v58 }
 0x140   :  { %v1084_v37 = vpop.f32.mrb[20].mxu1 }
 0x141   :  { %v1086_v22 = vpop.f32.mrb[21].mxu1  ;;  %v1085_v15 = vadd.f32 %v1084_v37, %v3530_v27 }
 0x142   :  { %v1088_v9 = vpop.f32.mrb[22].mxu1  ;;  %v1087_v8 = vadd.f32 %v1086_v22, %v3532_v58 }
 0x143   :  { %v1090_v30 = vpop.f32.mrb[23].mxu1  ;;  %v1089_v19 = vadd.f32 %v1088_v9, %v3530_v27 }
 0x148   :  { %v3511_v33 = vpop.f32.mrb[24].mxu1 }
 0x149   :  { %v3513_v50 = vpop.f32.mrb[25].mxu1 }
 0x14a   :  { %v3515_v10 = vpop.f32.mrb[26].mxu1 }
 0x14b   :  { %v3517_v51 = vpop.f32.mrb[27].mxu1 }
 0x150   :  { %v3519_v11 = vpop.f32.mrb[28].mxu1 }
 0x151   :  { %v3521_v55 = vpop.f32.mrb[29].mxu1 }
 0x152   :  { %v3523_v29 = vpop.f32.mrb[30].mxu1 }
 0x153   :  { %v3525_v7 = vpop.f32.mrb[31].mxu1 }
 0x15c   :  { %v1413_v16 = vpop.f32.mrb[32].mxu1 }
 0x15d   :  { %v1415_v38 = vpop.f32.mrb[33].mxu1 }
 0x15e   :  { %v1417_v44 = vpop.f32.mrb[34].mxu1 }
 0x15f   :  { %v1419_v49 = vpop.f32.mrb[35].mxu1 }
 0x164   :  { %v1423_v18 = vpop.f32.mrb[36].mxu1 }
 0x165   :  { %v1425_v57 = vpop.f32.mrb[37].mxu1 }
 0x166   :  { %v1427_v24 = vpop.f32.mrb[38].mxu1 }
 0x167   :  { %v1429_v25 = vpop.f32.mrb[39].mxu1 }
 0x16c   :  { %v1433_v31 = vpop.f32.mrb[40].mxu1 }
 0x16d   :  { %v1435_v3 = vpop.f32.mrb[41].mxu1 }
 0x16e   :  { %v1437_v36 = vpop.f32.mrb[42].mxu1 }
 0x16f   :  { %v1439_v40 = vpop.f32.mrb[43].mxu1 }
 0x174   :  { %v3539_v12 = vpop.f32.mrb[44].mxu1 }
 0x175   :  { %v1300_v13 = vpop.f32.mrb[16].mxu0  ;;  %v3542_v21 = vpop.f32.mrb[45].mxu1 }
 0x176   :  { %v2182_v41 = vadd.f32 %v1300_v13, %v1075_v28  ;;  %v1302_v42 = vpop.f32.mrb[17].mxu0 }
 0x177   :  { %v2185_v14 = vadd.f32 %v1302_v42, %v1077_v0  ;;  %v1304_v45 = vpop.f32.mrb[18].mxu0  ;;  %v1447_v0 = vpop.f32.mrb[46].mxu1 }
 0x178   :  { %v2188_v46 = vadd.f32 %v1304_v45, %v1079_v32  ;;  %v2183_v20 = vadd.f32 %v2182_v41, %v1413_v16  ;;  %v1306_v26 = vpop.f32.mrb[19].mxu0  ;;  %v1091_v16 = vadd.f32 %v1090_v30, %v3532_v58  ;;  %v1449_v13 = vpop.f32.mrb[47].mxu1  ;;  %v1095_v30 = vadd.f32 %v3511_v33, %v3530_v27 }
 0x179   :  { %v2191_v48 = vadd.f32 %v1306_v26, %v1081_v39  ;;  %v2186_v6 = vadd.f32 %v2185_v14, %v1415_v38 }
 0x17a   :  { %v2189_v5 = vadd.f32 %v2188_v46, %v1417_v44  ;;  %v1468_v23 = vmax.f32 %v2183_v20, 0.0 }
 0x17b   :  { %v2192_v17 = vadd.f32 %v2191_v48, %v1419_v49  ;;  %v1469_v32 = vmax.f32 %v2186_v6, 0.0  ;;  %v1097_v48 = vadd.f32 %v3513_v50, %v3532_v58 }
 0x17c   :  { %v1470_v28 = vmax.f32 %v2189_v5, 0.0 }
 0x17d   :  { %v1471_v39 = vmax.f32 %v2192_v17, 0.0  ;;  %v1310_v38 = vpop.f32.mrb[20].mxu0 }
 0x17e   :  { %v3546_v37 = vpack.c.bf16 %v1470_v28, %v1468_v23  ;;  %v2194_v44 = vadd.f32 %v1310_v38, %v1085_v15  ;;  %v1312_v41 = vpop.f32.mrb[21].mxu0  ;;  %v1099_v15 = vadd.f32 %v3515_v10, %v3530_v27 }
 0x17f   :  { %v3548_v42 = vpack.c.bf16 %v1471_v39, %v1469_v32  ;;  %v2197_v22 = vadd.f32 %v1312_v41, %v1087_v8  ;;  %v1314_v49 = vpop.f32.mrb[22].mxu0  ;;  %v1101_v8 = vadd.f32 %v3517_v51, %v3532_v58  ;;  %v1107_v41 = vadd.f32 %v3521_v55, %v3532_v58 }
 0x180   :  { %v2200_v14 = vadd.f32 %v1314_v49, %v1089_v19  ;;  %v2195_v45 = vadd.f32 %v2194_v44, %v1423_v18  ;;  %v1316_v9 = vpop.f32.mrb[23].mxu0  ;;  %v1105_v44 = vadd.f32 %v3519_v11, %v3530_v27  ;;  %v1109_v49 = vadd.f32 %v3523_v29, %v3530_v27 }
 0x181   :  { %v2203_v46 = vadd.f32 %v1316_v9, %v1091_v16  ;;  %v2198_v20 = vadd.f32 %v2197_v22, %v1425_v57  ;;  %v1111_v9 = vadd.f32 %v3525_v7, %v3532_v58 }
 0x182   :  { %v2201_v26 = vadd.f32 %v2200_v14, %v1427_v24  ;;  %v1472_v5 = vmax.f32 %v2195_v45, 0.0 }
 0x183   :  { %v2204_v6 = vadd.f32 %v2203_v46, %v1429_v25  ;;  %v1473_v18 = vmax.f32 %v2198_v20, 0.0 }
 0x184   :  { %v1474_v17 = vmax.f32 %v2201_v26, 0.0 }
 0x185   :  { %v1475_v19 = vmax.f32 %v2204_v6, 0.0  ;;  %v1320_v23 = vpop.f32.mrb[24].mxu0 }
 0x186   :  { %v3558_v57 = vpack.c.bf16 %v1474_v17, %v1472_v5  ;;  %v2206_v28 = vadd.f32 %v1320_v23, %v1095_v30  ;;  %v1322_v33 = vpop.f32.mrb[25].mxu0  ;;  %v1035_v17 = vadd.f32 %v3479_v52, %v3530_v27 }
 0x187   :  { %v3560_v24 = vpack.c.bf16 %v1475_v19, %v1473_v18  ;;  %v2209_v16 = vadd.f32 %v1322_v33, %v1097_v48  ;;  %v1324_v50 = vpop.f32.mrb[26].mxu0  ;;  %v1037_v19 = vadd.f32 %v3481_v53, %v3532_v58 }
 0x188   :  { %v2212_v25 = vadd.f32 %v1324_v50, %v1099_v15  ;;  %v2207_v32 = vadd.f32 %v2206_v28, %v1433_v31  ;;  %v1326_v39 = vpop.f32.mrb[27].mxu0 }
 0x189   :  { %v2215_v10 = vadd.f32 %v1326_v39, %v1101_v8  ;;  %v2210_v38 = vadd.f32 %v2209_v16, %v1435_v3 }
 0x18a   :  { %v2213_v51 = vadd.f32 %v2212_v25, %v1437_v36  ;;  %v1476_v14 = vmax.f32 %v2207_v32, 0.0 }
 0x18b   :  { %v2216_v22 = vadd.f32 %v2215_v10, %v1439_v40  ;;  %v1477_v31 = vmax.f32 %v2210_v38, 0.0 }
 0x18c   :  { %v1478_v45 = vmax.f32 %v2213_v51, 0.0 }
 0x18d   :  { %v1479_v46 = vmax.f32 %v2216_v22, 0.0  ;;  %v1330_v20 = vpop.f32.mrb[28].mxu0  ;;  %v1047_v22 = vadd.f32 %v3489_v59, %v3532_v58 }
 0x18e   :  { %v3570_v3 = vpack.c.bf16 %v1478_v45, %v1476_v14  ;;  %v2218_v30 = vadd.f32 %v1330_v20, %v1105_v44  ;;  %v1332_v11 = vpop.f32.mrb[29].mxu0  ;;  %v1049_v14 = vadd.f32 %v3491_v35, %v3530_v27 }
 0x18f   :  { %v3572_v36 = vpack.c.bf16 %v1479_v46, %v1477_v31  ;;  %v2221_v26 = vadd.f32 %v1332_v11, %v1107_v41  ;;  %v1334_v55 = vpop.f32.mrb[30].mxu0  ;;  %v1051_v31 = vadd.f32 %v3493_v62, %v3532_v58 }
 0x190   :  { %v2224_v40 = vadd.f32 %v1334_v55, %v1109_v49  ;;  %v2219_v48 = vadd.f32 %v2218_v30, %v3539_v12  ;;  %v1336_v29 = vpop.f32.mrb[31].mxu0  ;;  %v1039_v12 = vadd.f32 %v3483_v34, %v3530_v27  ;;  %v1045_v34 = vadd.f32 %v3487_v56, %v3530_v27 }
 0x191   :  { %v2227_v6 = vadd.f32 %v1336_v29, %v1111_v9  ;;  %v2222_v15 = vadd.f32 %v2221_v26, %v3542_v21  ;;  %v1057_v29 = vadd.f32 %v3497_v47, %v3532_v58 }
 0x192   :  { %v2225_v5 = vadd.f32 %v2224_v40, %v1447_v0  ;;  %v1480_v8 = vmax.f32 %v2219_v48, 0.0  ;;  %v1041_v0 = vadd.f32 %v3485_v54, %v3532_v58  ;;  %v1055_v48 = vadd.f32 %v3495_v43, %v3530_v27 }
 0x193   :  { %v2228_v7 = vadd.f32 %v2227_v6, %v1449_v13  ;;  %v1481_v23 = vmax.f32 %v2222_v15, 0.0  ;;  %v1059_v15 = vadd.f32 %v3499_v63, %v3530_v27 }
 0x194   :  { %v1482_v18 = vmax.f32 %v2225_v5, 0.0 }
 0x195   :  { %v1483_v28 = vmax.f32 %v2228_v7, 0.0  ;;  %v1373_v33 = vpop.f32.mrb[0].mxu0 }
 0x196   :  { %v3582_v16 = vpack.c.bf16 %v1482_v18, %v1480_v8  ;;  %v2150_v50 = vadd.f32 %v1373_v33, %v1035_v17  ;;  %v1375_v21 = vpop.f32.mrb[1].mxu0  ;;  %v1061_v17 = vadd.f32 %v3501_v1, %v3532_v58 }
 0x197   :  { %v3586_v13 = vpack.c.bf16 %v1483_v28, %v1481_v23  ;;  %v2152_v52 = vadd.f32 %v1375_v21, %v1037_v19  ;;  %v1377_v25 = vpop.f32.mrb[2].mxu0  ;;  %v1067_v21 = vadd.f32 %v3505_v2, %v3532_v58 }
 0x198   :  { %v2154_v32 = vadd.f32 %v1377_v25, %v1039_v12  ;;  %v1379_v39 = vpop.f32.mrb[3].mxu0  ;;  %v1452_v10 = vmax.f32 %v2150_v50, 0.0  ;;  %v1065_v50 = vadd.f32 %v3503_v60, %v3530_v27 }
 0x199   :  { %v2156_v53 = vadd.f32 %v1379_v39, %v1041_v0  ;;  %v1453_v44 = vmax.f32 %v2152_v52, 0.0  ;;  %v1069_v52 = vadd.f32 %v3507_v4, %v3530_v27  ;;  %v1071_v39 = vadd.f32 %v3509_v61, %v3532_v58  ;;  %v3624_v58 = vld [vmem:[%s3662_s4] ss:$0 sm:$0xff] }
 0x19a   :  { %v1454_v38 = vmax.f32 %v2154_v32, 0.0  ;;  %v2492_v4 = vmov 0.0|0.0   ;;  %v2494_v61 = vmov 0.0  }
 0x19b   :  { %v1455_v51 = vmax.f32 %v2156_v53, 0.0  ;;  %2093 = vmatprep.subr.bf16.mxu1 %v2492_v4 }
 0x19c   :  { %v1484_v41 = vpack.c.bf16 %v1454_v38, %v1452_v10 }
 0x19d   :  { %v1485_v49 = vpack.c.bf16 %v1455_v51, %v1453_v44  ;;  %v1383_v54 = vpop.f32.mrb[4].mxu0 }
 0x19e   :  { %v2158_v45 = vadd.f32 %v1383_v54, %v1045_v34  ;;  %v1385_v9 = vpop.f32.mrb[5].mxu0 }
 0x19f   :  { %v2160_v46 = vadd.f32 %v1385_v9, %v1047_v22  ;;  %v1387_v20 = vpop.f32.mrb[6].mxu0  ;;  %1667 = vmatprep.mubr.bf16.mxu1 %v1485_v49 }
 0x1a0   :  { %v2162_v30 = vadd.f32 %v1387_v20, %v1049_v14  ;;  %v1389_v11 = vpop.f32.mrb[7].mxu0  ;;  %1668 = vmatmul.mubr.bf16.vlgmr.msra.gmra.mrb[48].mxu1 %v1484_v41  ;;  %v1456_v26 = vmax.f32 %v2158_v45, 0.0 }
 0x1a1   :  { %v2164_v56 = vadd.f32 %v1389_v11, %v1051_v31  ;;  %v1457_v59 = vmax.f32 %v2160_v46, 0.0 }
 0x1a2   :  { %v1458_v55 = vmax.f32 %v2162_v30, 0.0 }
 0x1a3   :  { %v1459_v40 = vmax.f32 %v2164_v56, 0.0 }
 0x1a4   :  { %v1486_v35 = vpack.c.bf16 %v1458_v55, %v1456_v26 }
 0x1a5   :  { %v1487_v6 = vpack.c.bf16 %v1459_v40, %v1457_v59  ;;  %v1393_v62 = vpop.f32.mrb[8].mxu0 }
 0x1a6   :  { %v2166_v5 = vadd.f32 %v1393_v62, %v1055_v48  ;;  %v1395_v7 = vpop.f32.mrb[9].mxu0 }
 0x1a7   :  { %v2168_v8 = vadd.f32 %v1395_v7, %v1057_v29  ;;  %v1397_v18 = vpop.f32.mrb[10].mxu0  ;;  %1675 = vmatprep.mubr.bf16.mxu1 %v1487_v6 }
 0x1a8   :  { %v2170_v19 = vadd.f32 %v1397_v18, %v1059_v15  ;;  %v1399_v23 = vpop.f32.mrb[11].mxu0  ;;  %1676 = vmatmul.mubr.bf16.gmra.mrb[52].mxu1 %v1486_v35  ;;  %v1460_v28 = vmax.f32 %v2166_v5, 0.0 }
 0x1a9   :  { %v2172_v43 = vadd.f32 %v1399_v23, %v1061_v17  ;;  %v1461_v47 = vmax.f32 %v2168_v8, 0.0 }
 0x1aa   :  { %v1462_v33 = vmax.f32 %v2170_v19, 0.0 }
 0x1ab   :  { %v1463_v12 = vmax.f32 %v2172_v43, 0.0 }
 0x1ac   :  { %v1488_v63 = vpack.c.bf16 %v1462_v33, %v1460_v28 }
 0x1ad   :  { %v1489_v0 = vpack.c.bf16 %v1463_v12, %v1461_v47  ;;  %v1403_v1 = vpop.f32.mrb[12].mxu0 }
 0x1ae   :  { %v2174_v25 = vadd.f32 %v1403_v1, %v1065_v50  ;;  %v1405_v32 = vpop.f32.mrb[13].mxu0 }
 0x1af   :  { %v2176_v53 = vadd.f32 %v1405_v32, %v1067_v21  ;;  %v1407_v10 = vpop.f32.mrb[14].mxu0  ;;  %1683 = vmatprep.mubr.bf16.mxu1 %v1489_v0 }
 0x1b0   :  { %v2178_v38 = vadd.f32 %v1407_v10, %v1069_v52  ;;  %v1409_v44 = vpop.f32.mrb[15].mxu0  ;;  %1684 = vmatmul.mubr.bf16.gmra.mrb[56].mxu1 %v1488_v63  ;;  %v1464_v51 = vmax.f32 %v2174_v25, 0.0 }
 0x1b1   :  { %v2180_v60 = vadd.f32 %v1409_v44, %v1071_v39  ;;  %v1465_v2 = vmax.f32 %v2176_v53, 0.0 }
 0x1b2   :  { %v1466_v34 = vmax.f32 %v2178_v38, 0.0 }
 0x1b3   :  { %v1467_v41 = vmax.f32 %v2180_v60, 0.0 }
 0x1b4   :  { %v1490_v22 = vpack.c.bf16 %v1466_v34, %v1464_v51 }
 0x1b5   :  { %v1491_v49 = vpack.c.bf16 %v1467_v41, %v1465_v2 }
 0x1b7   :  { %1691 = vmatprep.mubr.bf16.mxu1 %v1491_v49 }
 0x1b8   :  { %1692 = vmatmul.mubr.bf16.gmra.mrb[60].mxu1 %v1490_v22 }
 0x1b9   :  { %1699 = vmatprep.mubr.bf16.mxu1 %v3548_v42 }
 0x1c0   :  { %1700 = vmatmul.mubr.bf16.gmra.mrb[64].mxu1 %v3546_v37 }
 0x1c1   :  { %1707 = vmatprep.mubr.bf16.mxu1 %v3560_v24 }
 0x1c8   :  { %1708 = vmatmul.mubr.bf16.gmra.mrb[68].mxu1 %v3558_v57 }
 0x1c9   :  { %1715 = vmatprep.mubr.bf16.mxu1 %v3572_v36 }
 0x1d0   :  { %1716 = vmatmul.mubr.bf16.gmra.mrb[72].mxu1 %v3570_v3 }
 0x1d1   :  { %1723 = vmatprep.mubr.bf16.mxu1 %v3586_v13 }
 0x1d8   :  { %1724 = vmatmul.mubr.bf16.gmra.mrb[76].mxu1 %v3582_v16 }
 0x1d9   :  { %2090 = vmatprep.mubr.msk.f32.mxu1 %vm2493_vm0, %v2494_v61 }
 0x273   :  { %v1993_v27 = vpop.f32.mrb[48].mxu1 }
 0x274   :  { %v1994_v37 = vpop.f32.mrb[49].mxu1 }
 0x275   :  { %v1995_v42 = vadd.f32 %v1994_v37, %v1993_v27  ;;  %v1996_v57 = vpop.f32.mrb[50].mxu1 }
 0x276   :  { %v1997_v24 = vpop.f32.mrb[51].mxu1 }
 0x277   :  { %v1670_v3 = vadd.f32 %v1995_v42, %v3624_v58  ;;  %v1998_v36 = vadd.f32 %v1997_v24, %v1996_v57 }
 0x279   :  { %v1673_v16 = vadd.f32 %v1998_v36, %v3624_v58  ;;  %v1732_v13 = vmax.f32 %v1670_v3, 0.0 }
 0x27b   :  { %v1733_v54 = vmax.f32 %v1673_v16, 0.0  ;;  %v1999_v14 = vpop.f32.mrb[52].mxu1 }
 0x27c   :  { %v2000_v45 = vpop.f32.mrb[53].mxu1 }
 0x27d   :  { %v2094_v9 = vpack.c.bf16 %v1733_v54, %v1732_v13  ;;  %v2001_v31 = vadd.f32 %v2000_v45, %v1999_v14  ;;  %v2002_v46 = vpop.f32.mrb[54].mxu1 }
 0x27e   :  { %v2003_v20 = vpop.f32.mrb[55].mxu1 }
 0x27f   :  { %v1678_v30 = vadd.f32 %v2001_v31, %v3624_v58  ;;  %v2004_v11 = vadd.f32 %v2003_v20, %v2002_v46  ;;  %2095 = vmatpush3.bf16.xpose.msra.mxu1 %v2094_v9 }
 0x280   :  { %2096 = vmatprep.subr.bf16.mxu1 %v2492_v4 }
 0x281   :  { %v1681_v56 = vadd.f32 %v2004_v11, %v3624_v58  ;;  %v1734_v26 = vmax.f32 %v1678_v30, 0.0 }
 0x283   :  { %v1735_v55 = vmax.f32 %v1681_v56, 0.0  ;;  %v2005_v59 = vpop.f32.mrb[56].mxu1 }
 0x284   :  { %v2006_v40 = vpop.f32.mrb[57].mxu1 }
 0x285   :  { %v2097_v48 = vpack.c.bf16 %v1735_v55, %v1734_v26  ;;  %v2007_v35 = vadd.f32 %v2006_v40, %v2005_v59  ;;  %v2008_v29 = vpop.f32.mrb[58].mxu1 }
 0x286   :  { %v2009_v6 = vpop.f32.mrb[59].mxu1 }
 0x287   :  { %v1686_v62 = vadd.f32 %v2007_v35, %v3624_v58  ;;  %v2010_v15 = vadd.f32 %v2009_v6, %v2008_v29  ;;  %2098 = vmatpush3.bf16.xpose.msra.mxu1 %v2097_v48  ;;  %v1748_v6 = vld [vmem:[%s3663_s5] sm:$0x1] }
 0x288   :  { %2099 = vmatprep.subr.bf16.mxu1 %v2492_v4 }
 0x289   :  { %v1689_v5 = vadd.f32 %v2010_v15, %v3624_v58  ;;  %v1736_v7 = vmax.f32 %v1686_v62, 0.0  ;;  %v1750_v62 = vstv %s3664_s6 }
 0x28b   :  { %v1737_v17 = vmax.f32 %v1689_v5, 0.0  ;;  %v2011_v8 = vpop.f32.mrb[60].mxu1 }
 0x28c   :  { %v2012_v18 = vpop.f32.mrb[61].mxu1 }
 0x28d   :  { %v2100_v19 = vpack.c.bf16 %v1737_v17, %v1736_v7  ;;  %v2013_v23 = vadd.f32 %v2012_v18, %v2011_v8  ;;  %v2014_v43 = vpop.f32.mrb[62].mxu1 }
 0x28e   :  { %v2015_v28 = vpop.f32.mrb[63].mxu1 }
 0x28f   :  { %v1694_v33 = vadd.f32 %v2013_v23, %v3624_v58  ;;  %v2016_v47 = vadd.f32 %v2015_v28, %v2014_v43  ;;  %2101 = vmatpush3.bf16.xpose.msra.mxu1 %v2100_v19 }
 0x290   :  { %2102 = vmatprep.subr.bf16.mxu1 %v2492_v4 }
 0x291   :  { %v1697_v12 = vadd.f32 %v2016_v47, %v3624_v58  ;;  %v1738_v50 = vmax.f32 %v1694_v33, 0.0 }
 0x293   :  { %v1739_v63 = vmax.f32 %v1697_v12, 0.0  ;;  %v2017_v21 = vpop.f32.mrb[64].mxu1 }
 0x294   :  { %v2018_v0 = vpop.f32.mrb[65].mxu1 }
 0x295   :  { %v2103_v1 = vpack.c.bf16 %v1739_v63, %v1738_v50  ;;  %v2019_v52 = vadd.f32 %v2018_v0, %v2017_v21  ;;  %v2020_v25 = vpop.f32.mrb[66].mxu1 }
 0x296   :  { %v2021_v32 = vpop.f32.mrb[67].mxu1 }
 0x297   :  { %v1702_v39 = vadd.f32 %v2019_v52, %v3624_v58  ;;  %v2022_v53 = vadd.f32 %v2021_v32, %v2020_v25  ;;  %2104 = vmatpush3.bf16.xpose.msra.mxu1 %v2103_v1 }
 0x298   :  { %2105 = vmatprep.subr.bf16.mxu1 %v2492_v4 }
 0x299   :  { %v1705_v10 = vadd.f32 %v2022_v53, %v3624_v58  ;;  %v1740_v38 = vmax.f32 %v1702_v39, 0.0 }
 0x29b   :  { %v1741_v44 = vmax.f32 %v1705_v10, 0.0  ;;  %v2023_v60 = vpop.f32.mrb[68].mxu1 }
 0x29c   :  { %v2024_v51 = vpop.f32.mrb[69].mxu1 }
 0x29d   :  { %v2106_v34 = vpack.c.bf16 %v1741_v44, %v1740_v38  ;;  %v2025_v2 = vadd.f32 %v2024_v51, %v2023_v60  ;;  %v2026_v41 = vpop.f32.mrb[70].mxu1 }
 0x29e   :  { %v2027_v22 = vpop.f32.mrb[71].mxu1 }
 0x29f   :  { %v1710_v49 = vadd.f32 %v2025_v2, %v3624_v58  ;;  %v2028_v61 = vadd.f32 %v2027_v22, %v2026_v41  ;;  %2107 = vmatpush3.bf16.xpose.msra.mxu1 %v2106_v34 }
 0x2a0   :  { %2108 = vmatprep.subr.bf16.mxu1 %v2492_v4 }
 0x2a1   :  { %v1713_v27 = vadd.f32 %v2028_v61, %v3624_v58  ;;  %v1742_v37 = vmax.f32 %v1710_v49, 0.0 }
 0x2a3   :  { %v1743_v42 = vmax.f32 %v1713_v27, 0.0  ;;  %v2029_v57 = vpop.f32.mrb[72].mxu1 }
 0x2a4   :  { %v2030_v24 = vpop.f32.mrb[73].mxu1 }
 0x2a5   :  { %v2109_v3 = vpack.c.bf16 %v1743_v42, %v1742_v37  ;;  %v2031_v36 = vadd.f32 %v2030_v24, %v2029_v57  ;;  %v2032_v16 = vpop.f32.mrb[74].mxu1 }
 0x2a6   :  { %v2033_v13 = vpop.f32.mrb[75].mxu1 }
 0x2a7   :  { %v1718_v54 = vadd.f32 %v2031_v36, %v3624_v58  ;;  %v2034_v14 = vadd.f32 %v2033_v13, %v2032_v16  ;;  %2110 = vmatpush3.bf16.xpose.msra.mxu1 %v2109_v3 }
 0x2a8   :  { %2111 = vmatprep.subr.bf16.mxu1 %v2492_v4 }
 0x2a9   :  { %v1721_v45 = vadd.f32 %v2034_v14, %v3624_v58  ;;  %v1744_v9 = vmax.f32 %v1718_v54, 0.0 }
 0x2ab   :  { %v1745_v31 = vmax.f32 %v1721_v45, 0.0  ;;  %v2035_v46 = vpop.f32.mrb[76].mxu1 }
 0x2ac   :  { %v2036_v20 = vpop.f32.mrb[77].mxu1 }
 0x2ad   :  { %v2112_v30 = vpack.c.bf16 %v1745_v31, %v1744_v9  ;;  %v2037_v11 = vadd.f32 %v2036_v20, %v2035_v46  ;;  %v2038_v56 = vpop.f32.mrb[78].mxu1 }
 0x2ae   :  { %v2039_v26 = vpop.f32.mrb[79].mxu1 }
 0x2af   :  { %v1726_v55 = vadd.f32 %v2037_v11, %v3624_v58  ;;  %v2040_v59 = vadd.f32 %v2039_v26, %v2038_v56  ;;  %2113 = vmatpush3.bf16.xpose.msra.mxu1 %v2112_v30 }
 0x2b0   :  { %2114 = vmatprep.subr.bf16.mxu1 %v2492_v4 }
 0x2b1   :  { %v1729_v40 = vadd.f32 %v2040_v59, %v3624_v58  ;;  %v1746_v48 = vmax.f32 %v1726_v55, 0.0 }
 0x2b3   :  { %v1747_v35 = vmax.f32 %v1729_v40, 0.0 }
 0x2b5   :  { %v2115_v29 = vpack.c.bf16 %v1747_v35, %v1746_v48 }
 0x2b7   :  { %2116 = vmatpush3.bf16.xpose.msra.mxu1 %v2115_v29 }
 0x2be   :  { %2091 = vmatmul.mubr.f32.vlgmr.msra.gmra.mrb[80].mxu1 %v1748_v6 }
 0x391   :  { %v1817_v15 = vpop.f32.mrb[80].mxu1 }
 0x392   :  { %v1818_v5 = vadd.f32 %v1817_v15, %v1750_v62  ;;  %v2092_v7 = vpop.f32.mrb[81].mxu1 }
 0x394   :  { %v1821_v17 = vsub.f32 0.0, %v1818_v5 }
 0x396   :  { %v1822_v4 = vmul.f32 1.442695, %v1821_v17 }
 0x398   :  { %2488 = vpow2.f32 %v1822_v4 }
 0x3a2   :  { %v2489_v58 = vpop.eup %2488 }
 0x3a3   :  { %v1824_v8 = vadd.f32 1.0, %v2489_v58 }
 0x3a5   :  { %2490 = vrcp.f32 %v1824_v8 }
 0x3af   :  { %v2491_v18 = vpop.eup %2490 }
 0x3b0   :  { %1827 = vst [vmem:[%s3665_s7] sm:$0x1] %v2491_v18 }

</bundles_post_ra>
